<compile_context>
chip_gen: v6e
topology: v6e:2x2x1
jax: 0.10.0
libtpu: 0.0.40
codegen_flags: <defaults>
</compile_context>

<pallas_src>
import functools

import jax
import jax.numpy as jnp
from jax.experimental import pallas as pl
from jax.experimental.pallas import tpu as pltpu

LANE = 128
SUBLANE = 8


def _round_up(x, m):
    return (x + m - 1) // m * m


def _pad_to(x, shape):
    out = jnp.zeros(shape, x.dtype)
    return out.at[tuple(slice(0, s) for s in x.shape)].set(x)


# ---------------------------------------------------------------------------
# Fused kernel (no grid): all 5 GIN layers unrolled + pool + fc1/fc2 + log_softmax.
#   per layer:  h <- mask_rows( BN( ReLU( ReLU(((A+I) h) W1 + b1) W2 + b2 ) ) )
#   readout:    out <- log_softmax( ReLU(S h Wfc1 + bfc1) Wfc2 + bfc2 )
# ---------------------------------------------------------------------------
def fused_gin_kernel(num_layers, num_classes, n_real,
                     a_ref, x0_ref,
                     w1_ref, b1_ref, w2_ref, b2_ref, scale_ref, shift_ref,
                     s_ref, wf1_ref, bf1_ref, wf2_ref, bf2_ref,
                     o_ref):
    h = x0_ref[...]                                   # [Np, Dp] f32 (pad rows = 0)
    a = a_ref[...]                                    # [Np, Np] bf16, self-loop folded

    # Keep padded node rows exactly zero (bias broadcast would otherwise
    # accumulate junk there across layers).
    row = jax.lax.broadcasted_iota(jnp.int32, h.shape, 0)
    row_mask = row < n_real

    for l in range(num_layers):                       # statically unrolled
        # GIN aggregation, eps = 0:  z = (1+eps)*h + sum_{j in N(i)} h_j = (A+I) h
        z = jnp.dot(a, h.astype(jnp.bfloat16),
                    preferred_element_type=jnp.float32)
        # GIN MLP:  ReLU(z W1 + b1) W2 + b2, then the outer F.relu.
        z = jnp.dot(z.astype(jnp.bfloat16), w1_ref[l],
                    preferred_element_type=jnp.float32) + b1_ref[l]
        z = jnp.maximum(z, 0.0)
        z = jnp.dot(z.astype(jnp.bfloat16), w2_ref[l],
                    preferred_element_type=jnp.float32) + b2_ref[l]
        z = jnp.maximum(z, 0.0)
        # BatchNorm1d (eval) folded to scale/shift; padded lanes have scale=shift=0.
        h = z * scale_ref[l] + shift_ref[l]
        h = jnp.where(row_mask, h, 0.0)

    # Readout head: global_add_pool (S @ h) + fc1 + ReLU + fc2 + log_softmax.
    pooled = jnp.dot(s_ref[...], h.astype(jnp.bfloat16),
                     preferred_element_type=jnp.float32)           # [Gp, Dp]
    y = jnp.dot(pooled.astype(jnp.bfloat16), wf1_ref[...],
                preferred_element_type=jnp.float32) + bf1_ref[...]
    y = jnp.maximum(y, 0.0)
    logits = jnp.dot(y.astype(jnp.bfloat16), wf2_ref[...],
                     preferred_element_type=jnp.float32) + bf2_ref[...]
    # Mask padded class lanes so log-softmax only sees the real classes.
    lane = jax.lax.broadcasted_iota(jnp.int32, logits.shape, 1)
    logits = jnp.where(lane < num_classes, logits, -1e30)
    m = jnp.max(logits, axis=-1, keepdims=True)
    lse = m + jnp.log(jnp.sum(jnp.exp(logits - m), axis=-1, keepdims=True))
    o_ref[...] = logits - lse


# ---------------------------------------------------------------------------
# Wrapper: pad / stack / fold params, launch one grid-less pallas_call.
# ---------------------------------------------------------------------------
@jax.jit
def gin_classifier_forward(a, s, x, layer_params, head_params):
    n, f = x.shape
    g = s.shape[0]
    dim = layer_params[0][2].shape[1]            # W2 output dim
    num_classes = head_params[2].shape[1]
    num_layers = len(layer_params)

    np_ = _round_up(n, LANE)                     # lane-dense adjacency
    dp = _round_up(max(dim, f), LANE)            # shared padded feature dim
    cp = _round_up(num_classes, LANE)            # lane-dense output
    gp = _round_up(g, SUBLANE)

    bf = jnp.bfloat16
    # Fold the GIN self-loop (eps = 0) into the adjacency: (1+eps)*I + A.
    # NOTE: 0/1 (and small-integer) entries are exact in bf16; keep A in f32 if
    # edge weights can exceed bf16's 8-bit mantissa.
    a_folded = a + jnp.eye(n, dtype=a.dtype)
    a_p = _pad_to(a_folded, (np_, np_)).astype(bf)
    x_p = _pad_to(x, (np_, dp)).astype(jnp.float32)
    s_p = _pad_to(s, (gp, np_)).astype(bf)

    w1s, b1s, w2s, b2s, scs, shs = [], [], [], [], [], []
    for (w1, b1, w2, b2, gamma, beta, mean, var) in layer_params:
        w1s.append(_pad_to(w1, (dp, dp)).astype(bf))
        b1s.append(_pad_to(b1, (1, dp)))
        w2s.append(_pad_to(w2, (dp, dp)).astype(bf))
        b2s.append(_pad_to(b2, (1, dp)))
        scale = gamma * jax.lax.rsqrt(var + 1e-5)
        shift = beta - mean * scale
        scs.append(_pad_to(scale, (1, dp)))      # padded lanes: scale = 0
        shs.append(_pad_to(shift, (1, dp)))      # padded lanes: shift = 0
    w1_s, b1_s = jnp.stack(w1s), jnp.stack(b1s)
    w2_s, b2_s = jnp.stack(w2s), jnp.stack(b2s)
    sc_s, sh_s = jnp.stack(scs), jnp.stack(shs)

    fw1, fb1, fw2, fb2 = head_params
    fw1_p = _pad_to(fw1, (dp, dp)).astype(bf)
    fb1_p = _pad_to(fb1, (1, dp))
    fw2_p = _pad_to(fw2, (dp, cp)).astype(bf)
    fb2_p = _pad_to(fb2, (1, cp))

    operands = (a_p, x_p, w1_s, b1_s, w2_s, b2_s, sc_s, sh_s,
                s_p, fw1_p, fb1_p, fw2_p, fb2_p)

    kernel = functools.partial(fused_gin_kernel, num_layers, num_classes, n)

    # Cost / VMEM accounting from the actual padded buffer sizes.
    flops = (num_layers * (2 * np_ * np_ * dp + 4 * np_ * dp * dp)
             + 2 * gp * np_ * dp + 2 * gp * dp * dp + 2 * gp * dp * cp)
    in_bytes = sum(int(o.size) * o.dtype.itemsize for o in operands)
    out_bytes = gp * cp * 4
    bytes_accessed = in_bytes + out_bytes
    # Everything is single-buffered and whole-array resident; 2x + 4 MiB headroom
    # covers in-kernel temporaries / compiler scratch while staying far below the
    # 32 MiB default scoped limit (important headroom on v7x's 64 MiB VMEM).
    vmem_limit = 2 * bytes_accessed + 4 * 1024 * 1024

    vmem_spec = pl.BlockSpec(memory_space=pltpu.MemorySpace.VMEM)

    out_p = pl.pallas_call(
        kernel,
        out_shape=jax.ShapeDtypeStruct((gp, cp), jnp.float32),
        in_specs=[vmem_spec] * len(operands),
        out_specs=vmem_spec,
        compiler_params=pltpu.CompilerParams(vmem_limit_bytes=vmem_limit),
        cost_estimate=pl.CostEstimate(
            flops=flops, transcendentals=gp * cp,
            bytes_accessed=bytes_accessed),
    )(*operands)

    return out_p[:g, :num_classes]


# ---------------------------------------------------------------------------
# Parameter construction (deterministic, torch-Linear-style uniform init).
# ---------------------------------------------------------------------------
def _linear_init(key, fan_in, fan_out):
    kw, kb = jax.random.split(key)
    bound = 1.0 / jnp.sqrt(float(fan_in))
    w = jax.random.uniform(kw, (fan_in, fan_out), jnp.float32, -bound, bound)
    b = jax.random.uniform(kb, (1, fan_out), jnp.float32, -bound, bound)
    return w, b


def make_params(key, num_features, dim, num_classes):
    keys = jax.random.split(key, 16)
    layers = []
    fin = num_features
    for i in range(5):
        w1, b1 = _linear_init(keys[2 * i], fin, dim)
        w2, b2 = _linear_init(keys[2 * i + 1], dim, dim)
        kg, kb_, km, kv = jax.random.split(keys[10 + i], 4)
        gamma = 1.0 + 0.1 * jax.random.normal(kg, (1, dim), jnp.float32)
        beta = 0.1 * jax.random.normal(kb_, (1, dim), jnp.float32)
        mean = 0.1 * jax.random.normal(km, (1, dim), jnp.float32)
        var = 0.5 + jax.random.uniform(kv, (1, dim), jnp.float32)
        layers.append((w1, b1, w2, b2, gamma, beta, mean, var))
        fin = dim
    kfc1, kfc2 = jax.random.split(keys[15])
    fc1_w, fc1_b = _linear_init(kfc1, dim, dim)
    fc2_w, fc2_b = _linear_init(kfc2, dim, num_classes)
    return layers, (fc1_w, fc1_b, fc2_w, fc2_b)


# ---------------------------------------------------------------------------
# Plain-JAX reference with the same bf16-operand / f32-accumulate matmul math.
# ---------------------------------------------------------------------------
def reference_forward(a, s, x, layer_params, head_params):
    bf = jnp.bfloat16
    n = x.shape[0]
    a_fold = (a + jnp.eye(n, dtype=a.dtype)).astype(bf)   # self-loop folded, eps=0
    h = x
    for (w1, b1, w2, b2, gamma, beta, mean, var) in layer_params:
        z = jnp.dot(a_fold, h.astype(bf), preferred_element_type=jnp.float32)
        z = jnp.dot(z.astype(bf), w1.astype(bf),
                    preferred_element_type=jnp.float32) + b1
        z = jnp.maximum(z, 0.0)
        z = jnp.dot(z.astype(bf), w2.astype(bf),
                    preferred_element_type=jnp.float32) + b2
        z = jnp.maximum(z, 0.0)
        scale = gamma * jax.lax.rsqrt(var + 1e-5)
        shift = beta - mean * scale
        h = z * scale + shift
    w1, b1, w2, b2 = head_params
    pooled = jnp.dot(s.astype(bf), h.astype(bf),
                     preferred_element_type=jnp.float32)
    y = jnp.dot(pooled.astype(bf), w1.astype(bf),
                preferred_element_type=jnp.float32) + b1
    y = jnp.maximum(y, 0.0)
    logits = jnp.dot(y.astype(bf), w2.astype(bf),
                     preferred_element_type=jnp.float32) + b2
    return jax.nn.log_softmax(logits, axis=-1)


if __name__ == "__main__":
    # Small synthetic graph batch: 2 graphs x 8 nodes = 16 nodes.
    NUM_NODES = 16
    NUM_GRAPHS = 2
    NUM_FEATURES = 8
    DIM = 32
    NUM_CLASSES = 4

    key = jax.random.PRNGKey(0)
    kx, kp = jax.random.split(key)

    # Node features.
    x = jax.random.normal(kx, (NUM_NODES, NUM_FEATURES), jnp.float32)

    # Deterministic edge_index: bidirectional ring per 8-node graph + one chord.
    src_list, dst_list = [], []
    for g in range(NUM_GRAPHS):
        off = g * 8
        for i in range(8):
            a_, b_ = off + i, off + (i + 1) % 8
            src_list += [a_, b_]
            dst_list += [b_, a_]
        src_list += [off + 0, off + 4]
        dst_list += [off + 4, off + 0]
    src = jnp.array(src_list, dtype=jnp.int32)
    dst = jnp.array(dst_list, dtype=jnp.int32)

    # Dense adjacency: A[dst, src] += 1  (neighbor-sum aggregation = A @ x).
    adj = jnp.zeros((NUM_NODES, NUM_NODES), jnp.float32).at[dst, src].add(1.0)

    # Batch assignment and pooling matrix S[g, n] (global_add_pool = S @ x).
    batch = jnp.array([0] * 8 + [1] * 8, dtype=jnp.int32)
    pool = jax.nn.one_hot(batch, NUM_GRAPHS, dtype=jnp.float32).T   # (G, N)

    layer_params, head_params = make_params(kp, NUM_FEATURES, DIM, NUM_CLASSES)

    out = gin_classifier_forward(adj, pool, x, layer_params, head_params)
    out = jax.block_until_ready(out)

    ref = reference_forward(adj, pool, x, layer_params, head_params)
    assert out.shape == (NUM_GRAPHS, NUM_CLASSES)
    assert jnp.allclose(out, ref, atol=5e-3, rtol=5e-3), (out, ref)

    print("KERNEL_OK")
</pallas_src>

<mosaic_0001>
module attributes {stable_mosaic.version = 11 : i64} {
  func.func @fused_gin_kernel(%arg0: memref<128x128xbf16, #tpu.memory_space<vmem>>, %arg1: memref<128x128xf32, #tpu.memory_space<vmem>>, %arg2: memref<5x128x128xbf16, #tpu.memory_space<vmem>>, %arg3: memref<5x1x128xf32, #tpu.memory_space<vmem>>, %arg4: memref<5x128x128xbf16, #tpu.memory_space<vmem>>, %arg5: memref<5x1x128xf32, #tpu.memory_space<vmem>>, %arg6: memref<5x1x128xf32, #tpu.memory_space<vmem>>, %arg7: memref<5x1x128xf32, #tpu.memory_space<vmem>>, %arg8: memref<8x128xbf16, #tpu.memory_space<vmem>>, %arg9: memref<128x128xbf16, #tpu.memory_space<vmem>>, %arg10: memref<1x128xf32, #tpu.memory_space<vmem>>, %arg11: memref<128x128xbf16, #tpu.memory_space<vmem>>, %arg12: memref<1x128xf32, #tpu.memory_space<vmem>>, %arg13: memref<8x128xf32, #tpu.memory_space<vmem>>) attributes {dimension_semantics = [], scalar_prefetch = 0 : i64, scratch_operands = 0 : i64, tpu.core_type = #tpu.core_type<tc>} {
    %c0 = arith.constant 0 : index
    %c0_0 = arith.constant 0 : index
    %0 = vector.load %arg1[%c0, %c0_0] : memref<128x128xf32, #tpu.memory_space<vmem>>, vector<128x128xf32>
    %c0_1 = arith.constant 0 : index
    %c0_2 = arith.constant 0 : index
    %1 = vector.load %arg0[%c0_1, %c0_2] : memref<128x128xbf16, #tpu.memory_space<vmem>>, vector<128x128xbf16>
    %2 = tpu.iota {dimensions = array<i32: 0>} : vector<128x128xi32>
    %c16_i32 = arith.constant 16 : i32
    %3 = vector.broadcast %c16_i32 : i32 to vector<128x128xi32>
    %4 = arith.cmpi slt, %2, %3 : vector<128x128xi32>
    %5 = arith.truncf %0 : vector<128x128xf32> to vector<128x128xbf16>
    %cst = arith.constant dense<0.000000e+00> : vector<128x128xf32>
    %6 = tpu.matmul %1, %5, %cst {dimension_numbers = #tpu.dot_dimension_numbers<[1], [0], [0], [1], [0, 0, 1, 1], [], []>} : vector<128x128xbf16>, vector<128x128xbf16>, vector<128x128xf32> -> vector<128x128xf32>
    %7 = arith.truncf %6 : vector<128x128xf32> to vector<128x128xbf16>
    %c0_3 = arith.constant 0 : index
    %c0_4 = arith.constant 0 : index
    %c0_5 = arith.constant 0 : index
    %8 = vector.load %arg2[%c0_3, %c0_4, %c0_5] : memref<5x128x128xbf16, #tpu.memory_space<vmem>>, vector<1x128x128xbf16>
    %9 = vector.shape_cast %8 : vector<1x128x128xbf16> to vector<128x128xbf16>
    %cst_6 = arith.constant dense<0.000000e+00> : vector<128x128xf32>
    %10 = tpu.matmul %7, %9, %cst_6 {dimension_numbers = #tpu.dot_dimension_numbers<[1], [0], [0], [1], [0, 0, 1, 1], [], []>} : vector<128x128xbf16>, vector<128x128xbf16>, vector<128x128xf32> -> vector<128x128xf32>
    %c0_7 = arith.constant 0 : index
    %c0_8 = arith.constant 0 : index
    %c0_9 = arith.constant 0 : index
    %11 = vector.load %arg3[%c0_7, %c0_8, %c0_9] : memref<5x1x128xf32, #tpu.memory_space<vmem>>, vector<1x1x128xf32>
    %12 = vector.shape_cast %11 : vector<1x1x128xf32> to vector<1x128xf32>
    %13 = vector.broadcast %12 : vector<1x128xf32> to vector<128x128xf32>
    %14 = arith.addf %10, %13 : vector<128x128xf32>
    %cst_10 = arith.constant 0.000000e+00 : f32
    %15 = vector.broadcast %cst_10 : f32 to vector<128x128xf32>
    %16 = arith.maximumf %14, %15 : vector<128x128xf32>
    %17 = arith.truncf %16 : vector<128x128xf32> to vector<128x128xbf16>
    %c0_11 = arith.constant 0 : index
    %c0_12 = arith.constant 0 : index
    %c0_13 = arith.constant 0 : index
    %18 = vector.load %arg4[%c0_11, %c0_12, %c0_13] : memref<5x128x128xbf16, #tpu.memory_space<vmem>>, vector<1x128x128xbf16>
    %19 = vector.shape_cast %18 : vector<1x128x128xbf16> to vector<128x128xbf16>
    %cst_14 = arith.constant dense<0.000000e+00> : vector<128x128xf32>
    %20 = tpu.matmul %17, %19, %cst_14 {dimension_numbers = #tpu.dot_dimension_numbers<[1], [0], [0], [1], [0, 0, 1, 1], [], []>} : vector<128x128xbf16>, vector<128x128xbf16>, vector<128x128xf32> -> vector<128x128xf32>
    %c0_15 = arith.constant 0 : index
    %c0_16 = arith.constant 0 : index
    %c0_17 = arith.constant 0 : index
    %21 = vector.load %arg5[%c0_15, %c0_16, %c0_17] : memref<5x1x128xf32, #tpu.memory_space<vmem>>, vector<1x1x128xf32>
    %22 = vector.shape_cast %21 : vector<1x1x128xf32> to vector<1x128xf32>
    %23 = vector.broadcast %22 : vector<1x128xf32> to vector<128x128xf32>
    %24 = arith.addf %20, %23 : vector<128x128xf32>
    %cst_18 = arith.constant 0.000000e+00 : f32
    %25 = vector.broadcast %cst_18 : f32 to vector<128x128xf32>
    %26 = arith.maximumf %24, %25 : vector<128x128xf32>
    %c0_19 = arith.constant 0 : index
    %c0_20 = arith.constant 0 : index
    %c0_21 = arith.constant 0 : index
    %27 = vector.load %arg6[%c0_19, %c0_20, %c0_21] : memref<5x1x128xf32, #tpu.memory_space<vmem>>, vector<1x1x128xf32>
    %28 = vector.shape_cast %27 : vector<1x1x128xf32> to vector<1x128xf32>
    %29 = vector.broadcast %28 : vector<1x128xf32> to vector<128x128xf32>
    %30 = arith.mulf %26, %29 : vector<128x128xf32>
    %c0_22 = arith.constant 0 : index
    %c0_23 = arith.constant 0 : index
    %c0_24 = arith.constant 0 : index
    %31 = vector.load %arg7[%c0_22, %c0_23, %c0_24] : memref<5x1x128xf32, #tpu.memory_space<vmem>>, vector<1x1x128xf32>
    %32 = vector.shape_cast %31 : vector<1x1x128xf32> to vector<1x128xf32>
    %33 = vector.broadcast %32 : vector<1x128xf32> to vector<128x128xf32>
    %34 = arith.addf %30, %33 : vector<128x128xf32>
    %cst_25 = arith.constant 0.000000e+00 : f32
    %35 = vector.broadcast %cst_25 : f32 to vector<128x128xf32>
    %36 = arith.select %4, %34, %35 : vector<128x128xi1>, vector<128x128xf32>
    %37 = arith.truncf %36 : vector<128x128xf32> to vector<128x128xbf16>
    %cst_26 = arith.constant dense<0.000000e+00> : vector<128x128xf32>
    %38 = tpu.matmul %1, %37, %cst_26 {dimension_numbers = #tpu.dot_dimension_numbers<[1], [0], [0], [1], [0, 0, 1, 1], [], []>} : vector<128x128xbf16>, vector<128x128xbf16>, vector<128x128xf32> -> vector<128x128xf32>
    %39 = arith.truncf %38 : vector<128x128xf32> to vector<128x128xbf16>
    %c1 = arith.constant 1 : index
    %c0_27 = arith.constant 0 : index
    %c0_28 = arith.constant 0 : index
    %40 = vector.load %arg2[%c1, %c0_27, %c0_28] : memref<5x128x128xbf16, #tpu.memory_space<vmem>>, vector<1x128x128xbf16>
    %41 = vector.shape_cast %40 : vector<1x128x128xbf16> to vector<128x128xbf16>
    %cst_29 = arith.constant dense<0.000000e+00> : vector<128x128xf32>
    %42 = tpu.matmul %39, %41, %cst_29 {dimension_numbers = #tpu.dot_dimension_numbers<[1], [0], [0], [1], [0, 0, 1, 1], [], []>} : vector<128x128xbf16>, vector<128x128xbf16>, vector<128x128xf32> -> vector<128x128xf32>
    %c1_30 = arith.constant 1 : index
    %c0_31 = arith.constant 0 : index
    %c0_32 = arith.constant 0 : index
    %43 = vector.load %arg3[%c1_30, %c0_31, %c0_32] : memref<5x1x128xf32, #tpu.memory_space<vmem>>, vector<1x1x128xf32>
    %44 = vector.shape_cast %43 : vector<1x1x128xf32> to vector<1x128xf32>
    %45 = vector.broadcast %44 : vector<1x128xf32> to vector<128x128xf32>
    %46 = arith.addf %42, %45 : vector<128x128xf32>
    %cst_33 = arith.constant 0.000000e+00 : f32
    %47 = vector.broadcast %cst_33 : f32 to vector<128x128xf32>
    %48 = arith.maximumf %46, %47 : vector<128x128xf32>
    %49 = arith.truncf %48 : vector<128x128xf32> to vector<128x128xbf16>
    %c1_34 = arith.constant 1 : index
    %c0_35 = arith.constant 0 : index
    %c0_36 = arith.constant 0 : index
    %50 = vector.load %arg4[%c1_34, %c0_35, %c0_36] : memref<5x128x128xbf16, #tpu.memory_space<vmem>>, vector<1x128x128xbf16>
    %51 = vector.shape_cast %50 : vector<1x128x128xbf16> to vector<128x128xbf16>
    %cst_37 = arith.constant dense<0.000000e+00> : vector<128x128xf32>
    %52 = tpu.matmul %49, %51, %cst_37 {dimension_numbers = #tpu.dot_dimension_numbers<[1], [0], [0], [1], [0, 0, 1, 1], [], []>} : vector<128x128xbf16>, vector<128x128xbf16>, vector<128x128xf32> -> vector<128x128xf32>
    %c1_38 = arith.constant 1 : index
    %c0_39 = arith.constant 0 : index
    %c0_40 = arith.constant 0 : index
    %53 = vector.load %arg5[%c1_38, %c0_39, %c0_40] : memref<5x1x128xf32, #tpu.memory_space<vmem>>, vector<1x1x128xf32>
    %54 = vector.shape_cast %53 : vector<1x1x128xf32> to vector<1x128xf32>
    %55 = vector.broadcast %54 : vector<1x128xf32> to vector<128x128xf32>
    %56 = arith.addf %52, %55 : vector<128x128xf32>
    %cst_41 = arith.constant 0.000000e+00 : f32
    %57 = vector.broadcast %cst_41 : f32 to vector<128x128xf32>
    %58 = arith.maximumf %56, %57 : vector<128x128xf32>
    %c1_42 = arith.constant 1 : index
    %c0_43 = arith.constant 0 : index
    %c0_44 = arith.constant 0 : index
    %59 = vector.load %arg6[%c1_42, %c0_43, %c0_44] : memref<5x1x128xf32, #tpu.memory_space<vmem>>, vector<1x1x128xf32>
    %60 = vector.shape_cast %59 : vector<1x1x128xf32> to vector<1x128xf32>
    %61 = vector.broadcast %60 : vector<1x128xf32> to vector<128x128xf32>
    %62 = arith.mulf %58, %61 : vector<128x128xf32>
    %c1_45 = arith.constant 1 : index
    %c0_46 = arith.constant 0 : index
    %c0_47 = arith.constant 0 : index
    %63 = vector.load %arg7[%c1_45, %c0_46, %c0_47] : memref<5x1x128xf32, #tpu.memory_space<vmem>>, vector<1x1x128xf32>
    %64 = vector.shape_cast %63 : vector<1x1x128xf32> to vector<1x128xf32>
    %65 = vector.broadcast %64 : vector<1x128xf32> to vector<128x128xf32>
    %66 = arith.addf %62, %65 : vector<128x128xf32>
    %cst_48 = arith.constant 0.000000e+00 : f32
    %67 = vector.broadcast %cst_48 : f32 to vector<128x128xf32>
    %68 = arith.select %4, %66, %67 : vector<128x128xi1>, vector<128x128xf32>
    %69 = arith.truncf %68 : vector<128x128xf32> to vector<128x128xbf16>
    %cst_49 = arith.constant dense<0.000000e+00> : vector<128x128xf32>
    %70 = tpu.matmul %1, %69, %cst_49 {dimension_numbers = #tpu.dot_dimension_numbers<[1], [0], [0], [1], [0, 0, 1, 1], [], []>} : vector<128x128xbf16>, vector<128x128xbf16>, vector<128x128xf32> -> vector<128x128xf32>
    %71 = arith.truncf %70 : vector<128x128xf32> to vector<128x128xbf16>
    %c2 = arith.constant 2 : index
    %c0_50 = arith.constant 0 : index
    %c0_51 = arith.constant 0 : index
    %72 = vector.load %arg2[%c2, %c0_50, %c0_51] : memref<5x128x128xbf16, #tpu.memory_space<vmem>>, vector<1x128x128xbf16>
    %73 = vector.shape_cast %72 : vector<1x128x128xbf16> to vector<128x128xbf16>
    %cst_52 = arith.constant dense<0.000000e+00> : vector<128x128xf32>
    %74 = tpu.matmul %71, %73, %cst_52 {dimension_numbers = #tpu.dot_dimension_numbers<[1], [0], [0], [1], [0, 0, 1, 1], [], []>} : vector<128x128xbf16>, vector<128x128xbf16>, vector<128x128xf32> -> vector<128x128xf32>
    %c2_53 = arith.constant 2 : index
    %c0_54 = arith.constant 0 : index
    %c0_55 = arith.constant 0 : index
    %75 = vector.load %arg3[%c2_53, %c0_54, %c0_55] : memref<5x1x128xf32, #tpu.memory_space<vmem>>, vector<1x1x128xf32>
    %76 = vector.shape_cast %75 : vector<1x1x128xf32> to vector<1x128xf32>
    %77 = vector.broadcast %76 : vector<1x128xf32> to vector<128x128xf32>
    %78 = arith.addf %74, %77 : vector<128x128xf32>
    %cst_56 = arith.constant 0.000000e+00 : f32
    %79 = vector.broadcast %cst_56 : f32 to vector<128x128xf32>
    %80 = arith.maximumf %78, %79 : vector<128x128xf32>
    %81 = arith.truncf %80 : vector<128x128xf32> to vector<128x128xbf16>
    %c2_57 = arith.constant 2 : index
    %c0_58 = arith.constant 0 : index
    %c0_59 = arith.constant 0 : index
    %82 = vector.load %arg4[%c2_57, %c0_58, %c0_59] : memref<5x128x128xbf16, #tpu.memory_space<vmem>>, vector<1x128x128xbf16>
    %83 = vector.shape_cast %82 : vector<1x128x128xbf16> to vector<128x128xbf16>
    %cst_60 = arith.constant dense<0.000000e+00> : vector<128x128xf32>
    %84 = tpu.matmul %81, %83, %cst_60 {dimension_numbers = #tpu.dot_dimension_numbers<[1], [0], [0], [1], [0, 0, 1, 1], [], []>} : vector<128x128xbf16>, vector<128x128xbf16>, vector<128x128xf32> -> vector<128x128xf32>
    %c2_61 = arith.constant 2 : index
    %c0_62 = arith.constant 0 : index
    %c0_63 = arith.constant 0 : index
    %85 = vector.load %arg5[%c2_61, %c0_62, %c0_63] : memref<5x1x128xf32, #tpu.memory_space<vmem>>, vector<1x1x128xf32>
    %86 = vector.shape_cast %85 : vector<1x1x128xf32> to vector<1x128xf32>
    %87 = vector.broadcast %86 : vector<1x128xf32> to vector<128x128xf32>
    %88 = arith.addf %84, %87 : vector<128x128xf32>
    %cst_64 = arith.constant 0.000000e+00 : f32
    %89 = vector.broadcast %cst_64 : f32 to vector<128x128xf32>
    %90 = arith.maximumf %88, %89 : vector<128x128xf32>
    %c2_65 = arith.constant 2 : index
    %c0_66 = arith.constant 0 : index
    %c0_67 = arith.constant 0 : index
    %91 = vector.load %arg6[%c2_65, %c0_66, %c0_67] : memref<5x1x128xf32, #tpu.memory_space<vmem>>, vector<1x1x128xf32>
    %92 = vector.shape_cast %91 : vector<1x1x128xf32> to vector<1x128xf32>
    %93 = vector.broadcast %92 : vector<1x128xf32> to vector<128x128xf32>
    %94 = arith.mulf %90, %93 : vector<128x128xf32>
    %c2_68 = arith.constant 2 : index
    %c0_69 = arith.constant 0 : index
    %c0_70 = arith.constant 0 : index
    %95 = vector.load %arg7[%c2_68, %c0_69, %c0_70] : memref<5x1x128xf32, #tpu.memory_space<vmem>>, vector<1x1x128xf32>
    %96 = vector.shape_cast %95 : vector<1x1x128xf32> to vector<1x128xf32>
    %97 = vector.broadcast %96 : vector<1x128xf32> to vector<128x128xf32>
    %98 = arith.addf %94, %97 : vector<128x128xf32>
    %cst_71 = arith.constant 0.000000e+00 : f32
    %99 = vector.broadcast %cst_71 : f32 to vector<128x128xf32>
    %100 = arith.select %4, %98, %99 : vector<128x128xi1>, vector<128x128xf32>
    %101 = arith.truncf %100 : vector<128x128xf32> to vector<128x128xbf16>
    %cst_72 = arith.constant dense<0.000000e+00> : vector<128x128xf32>
    %102 = tpu.matmul %1, %101, %cst_72 {dimension_numbers = #tpu.dot_dimension_numbers<[1], [0], [0], [1], [0, 0, 1, 1], [], []>} : vector<128x128xbf16>, vector<128x128xbf16>, vector<128x128xf32> -> vector<128x128xf32>
    %103 = arith.truncf %102 : vector<128x128xf32> to vector<128x128xbf16>
    %c3 = arith.constant 3 : index
    %c0_73 = arith.constant 0 : index
    %c0_74 = arith.constant 0 : index
    %104 = vector.load %arg2[%c3, %c0_73, %c0_74] : memref<5x128x128xbf16, #tpu.memory_space<vmem>>, vector<1x128x128xbf16>
    %105 = vector.shape_cast %104 : vector<1x128x128xbf16> to vector<128x128xbf16>
    %cst_75 = arith.constant dense<0.000000e+00> : vector<128x128xf32>
    %106 = tpu.matmul %103, %105, %cst_75 {dimension_numbers = #tpu.dot_dimension_numbers<[1], [0], [0], [1], [0, 0, 1, 1], [], []>} : vector<128x128xbf16>, vector<128x128xbf16>, vector<128x128xf32> -> vector<128x128xf32>
    %c3_76 = arith.constant 3 : index
    %c0_77 = arith.constant 0 : index
    %c0_78 = arith.constant 0 : index
    %107 = vector.load %arg3[%c3_76, %c0_77, %c0_78] : memref<5x1x128xf32, #tpu.memory_space<vmem>>, vector<1x1x128xf32>
    %108 = vector.shape_cast %107 : vector<1x1x128xf32> to vector<1x128xf32>
    %109 = vector.broadcast %108 : vector<1x128xf32> to vector<128x128xf32>
    %110 = arith.addf %106, %109 : vector<128x128xf32>
    %cst_79 = arith.constant 0.000000e+00 : f32
    %111 = vector.broadcast %cst_79 : f32 to vector<128x128xf32>
    %112 = arith.maximumf %110, %111 : vector<128x128xf32>
    %113 = arith.truncf %112 : vector<128x128xf32> to vector<128x128xbf16>
    %c3_80 = arith.constant 3 : index
    %c0_81 = arith.constant 0 : index
    %c0_82 = arith.constant 0 : index
    %114 = vector.load %arg4[%c3_80, %c0_81, %c0_82] : memref<5x128x128xbf16, #tpu.memory_space<vmem>>, vector<1x128x128xbf16>
    %115 = vector.shape_cast %114 : vector<1x128x128xbf16> to vector<128x128xbf16>
    %cst_83 = arith.constant dense<0.000000e+00> : vector<128x128xf32>
    %116 = tpu.matmul %113, %115, %cst_83 {dimension_numbers = #tpu.dot_dimension_numbers<[1], [0], [0], [1], [0, 0, 1, 1], [], []>} : vector<128x128xbf16>, vector<128x128xbf16>, vector<128x128xf32> -> vector<128x128xf32>
    %c3_84 = arith.constant 3 : index
    %c0_85 = arith.constant 0 : index
    %c0_86 = arith.constant 0 : index
    %117 = vector.load %arg5[%c3_84, %c0_85, %c0_86] : memref<5x1x128xf32, #tpu.memory_space<vmem>>, vector<1x1x128xf32>
    %118 = vector.shape_cast %117 : vector<1x1x128xf32> to vector<1x128xf32>
    %119 = vector.broadcast %118 : vector<1x128xf32> to vector<128x128xf32>
    %120 = arith.addf %116, %119 : vector<128x128xf32>
    %cst_87 = arith.constant 0.000000e+00 : f32
    %121 = vector.broadcast %cst_87 : f32 to vector<128x128xf32>
    %122 = arith.maximumf %120, %121 : vector<128x128xf32>
    %c3_88 = arith.constant 3 : index
    %c0_89 = arith.constant 0 : index
    %c0_90 = arith.constant 0 : index
    %123 = vector.load %arg6[%c3_88, %c0_89, %c0_90] : memref<5x1x128xf32, #tpu.memory_space<vmem>>, vector<1x1x128xf32>
    %124 = vector.shape_cast %123 : vector<1x1x128xf32> to vector<1x128xf32>
    %125 = vector.broadcast %124 : vector<1x128xf32> to vector<128x128xf32>
    %126 = arith.mulf %122, %125 : vector<128x128xf32>
    %c3_91 = arith.constant 3 : index
    %c0_92 = arith.constant 0 : index
    %c0_93 = arith.constant 0 : index
    %127 = vector.load %arg7[%c3_91, %c0_92, %c0_93] : memref<5x1x128xf32, #tpu.memory_space<vmem>>, vector<1x1x128xf32>
    %128 = vector.shape_cast %127 : vector<1x1x128xf32> to vector<1x128xf32>
    %129 = vector.broadcast %128 : vector<1x128xf32> to vector<128x128xf32>
    %130 = arith.addf %126, %129 : vector<128x128xf32>
    %cst_94 = arith.constant 0.000000e+00 : f32
    %131 = vector.broadcast %cst_94 : f32 to vector<128x128xf32>
    %132 = arith.select %4, %130, %131 : vector<128x128xi1>, vector<128x128xf32>
    %133 = arith.truncf %132 : vector<128x128xf32> to vector<128x128xbf16>
    %cst_95 = arith.constant dense<0.000000e+00> : vector<128x128xf32>
    %134 = tpu.matmul %1, %133, %cst_95 {dimension_numbers = #tpu.dot_dimension_numbers<[1], [0], [0], [1], [0, 0, 1, 1], [], []>} : vector<128x128xbf16>, vector<128x128xbf16>, vector<128x128xf32> -> vector<128x128xf32>
    %135 = arith.truncf %134 : vector<128x128xf32> to vector<128x128xbf16>
    %c4 = arith.constant 4 : index
    %c0_96 = arith.constant 0 : index
    %c0_97 = arith.constant 0 : index
    %136 = vector.load %arg2[%c4, %c0_96, %c0_97] : memref<5x128x128xbf16, #tpu.memory_space<vmem>>, vector<1x128x128xbf16>
    %137 = vector.shape_cast %136 : vector<1x128x128xbf16> to vector<128x128xbf16>
    %cst_98 = arith.constant dense<0.000000e+00> : vector<128x128xf32>
    %138 = tpu.matmul %135, %137, %cst_98 {dimension_numbers = #tpu.dot_dimension_numbers<[1], [0], [0], [1], [0, 0, 1, 1], [], []>} : vector<128x128xbf16>, vector<128x128xbf16>, vector<128x128xf32> -> vector<128x128xf32>
    %c4_99 = arith.constant 4 : index
    %c0_100 = arith.constant 0 : index
    %c0_101 = arith.constant 0 : index
    %139 = vector.load %arg3[%c4_99, %c0_100, %c0_101] : memref<5x1x128xf32, #tpu.memory_space<vmem>>, vector<1x1x128xf32>
    %140 = vector.shape_cast %139 : vector<1x1x128xf32> to vector<1x128xf32>
    %141 = vector.broadcast %140 : vector<1x128xf32> to vector<128x128xf32>
    %142 = arith.addf %138, %141 : vector<128x128xf32>
    %cst_102 = arith.constant 0.000000e+00 : f32
    %143 = vector.broadcast %cst_102 : f32 to vector<128x128xf32>
    %144 = arith.maximumf %142, %143 : vector<128x128xf32>
    %145 = arith.truncf %144 : vector<128x128xf32> to vector<128x128xbf16>
    %c4_103 = arith.constant 4 : index
    %c0_104 = arith.constant 0 : index
    %c0_105 = arith.constant 0 : index
    %146 = vector.load %arg4[%c4_103, %c0_104, %c0_105] : memref<5x128x128xbf16, #tpu.memory_space<vmem>>, vector<1x128x128xbf16>
    %147 = vector.shape_cast %146 : vector<1x128x128xbf16> to vector<128x128xbf16>
    %cst_106 = arith.constant dense<0.000000e+00> : vector<128x128xf32>
    %148 = tpu.matmul %145, %147, %cst_106 {dimension_numbers = #tpu.dot_dimension_numbers<[1], [0], [0], [1], [0, 0, 1, 1], [], []>} : vector<128x128xbf16>, vector<128x128xbf16>, vector<128x128xf32> -> vector<128x128xf32>
    %c4_107 = arith.constant 4 : index
    %c0_108 = arith.constant 0 : index
    %c0_109 = arith.constant 0 : index
    %149 = vector.load %arg5[%c4_107, %c0_108, %c0_109] : memref<5x1x128xf32, #tpu.memory_space<vmem>>, vector<1x1x128xf32>
    %150 = vector.shape_cast %149 : vector<1x1x128xf32> to vector<1x128xf32>
    %151 = vector.broadcast %150 : vector<1x128xf32> to vector<128x128xf32>
    %152 = arith.addf %148, %151 : vector<128x128xf32>
    %cst_110 = arith.constant 0.000000e+00 : f32
    %153 = vector.broadcast %cst_110 : f32 to vector<128x128xf32>
    %154 = arith.maximumf %152, %153 : vector<128x128xf32>
    %c4_111 = arith.constant 4 : index
    %c0_112 = arith.constant 0 : index
    %c0_113 = arith.constant 0 : index
    %155 = vector.load %arg6[%c4_111, %c0_112, %c0_113] : memref<5x1x128xf32, #tpu.memory_space<vmem>>, vector<1x1x128xf32>
    %156 = vector.shape_cast %155 : vector<1x1x128xf32> to vector<1x128xf32>
    %157 = vector.broadcast %156 : vector<1x128xf32> to vector<128x128xf32>
    %158 = arith.mulf %154, %157 : vector<128x128xf32>
    %c4_114 = arith.constant 4 : index
    %c0_115 = arith.constant 0 : index
    %c0_116 = arith.constant 0 : index
    %159 = vector.load %arg7[%c4_114, %c0_115, %c0_116] : memref<5x1x128xf32, #tpu.memory_space<vmem>>, vector<1x1x128xf32>
    %160 = vector.shape_cast %159 : vector<1x1x128xf32> to vector<1x128xf32>
    %161 = vector.broadcast %160 : vector<1x128xf32> to vector<128x128xf32>
    %162 = arith.addf %158, %161 : vector<128x128xf32>
    %cst_117 = arith.constant 0.000000e+00 : f32
    %163 = vector.broadcast %cst_117 : f32 to vector<128x128xf32>
    %164 = arith.select %4, %162, %163 : vector<128x128xi1>, vector<128x128xf32>
    %c0_118 = arith.constant 0 : index
    %c0_119 = arith.constant 0 : index
    %165 = vector.load %arg8[%c0_118, %c0_119] : memref<8x128xbf16, #tpu.memory_space<vmem>>, vector<8x128xbf16>
    %166 = arith.truncf %164 : vector<128x128xf32> to vector<128x128xbf16>
    %cst_120 = arith.constant dense<0.000000e+00> : vector<8x128xf32>
    %167 = tpu.matmul %165, %166, %cst_120 {dimension_numbers = #tpu.dot_dimension_numbers<[1], [0], [0], [1], [0, 0, 1, 1], [], []>} : vector<8x128xbf16>, vector<128x128xbf16>, vector<8x128xf32> -> vector<8x128xf32>
    %168 = arith.truncf %167 : vector<8x128xf32> to vector<8x128xbf16>
    %c0_121 = arith.constant 0 : index
    %c0_122 = arith.constant 0 : index
    %169 = vector.load %arg9[%c0_121, %c0_122] : memref<128x128xbf16, #tpu.memory_space<vmem>>, vector<128x128xbf16>
    %cst_123 = arith.constant dense<0.000000e+00> : vector<8x128xf32>
    %170 = tpu.matmul %168, %169, %cst_123 {dimension_numbers = #tpu.dot_dimension_numbers<[1], [0], [0], [1], [0, 0, 1, 1], [], []>} : vector<8x128xbf16>, vector<128x128xbf16>, vector<8x128xf32> -> vector<8x128xf32>
    %c0_124 = arith.constant 0 : index
    %c0_125 = arith.constant 0 : index
    %171 = vector.load %arg10[%c0_124, %c0_125] : memref<1x128xf32, #tpu.memory_space<vmem>>, vector<1x128xf32>
    %172 = vector.broadcast %171 : vector<1x128xf32> to vector<8x128xf32>
    %173 = arith.addf %170, %172 : vector<8x128xf32>
    %cst_126 = arith.constant 0.000000e+00 : f32
    %174 = vector.broadcast %cst_126 : f32 to vector<8x128xf32>
    %175 = arith.maximumf %173, %174 : vector<8x128xf32>
    %176 = arith.truncf %175 : vector<8x128xf32> to vector<8x128xbf16>
    %c0_127 = arith.constant 0 : index
    %c0_128 = arith.constant 0 : index
    %177 = vector.load %arg11[%c0_127, %c0_128] : memref<128x128xbf16, #tpu.memory_space<vmem>>, vector<128x128xbf16>
    %cst_129 = arith.constant dense<0.000000e+00> : vector<8x128xf32>
    %178 = tpu.matmul %176, %177, %cst_129 {dimension_numbers = #tpu.dot_dimension_numbers<[1], [0], [0], [1], [0, 0, 1, 1], [], []>} : vector<8x128xbf16>, vector<128x128xbf16>, vector<8x128xf32> -> vector<8x128xf32>
    %c0_130 = arith.constant 0 : index
    %c0_131 = arith.constant 0 : index
    %179 = vector.load %arg12[%c0_130, %c0_131] : memref<1x128xf32, #tpu.memory_space<vmem>>, vector<1x128xf32>
    %180 = vector.broadcast %179 : vector<1x128xf32> to vector<8x128xf32>
    %181 = arith.addf %178, %180 : vector<8x128xf32>
    %182 = tpu.iota {dimensions = array<i32: 1>} : vector<8x128xi32>
    %c4_i32 = arith.constant 4 : i32
    %183 = vector.broadcast %c4_i32 : i32 to vector<8x128xi32>
    %184 = arith.cmpi slt, %182, %183 : vector<8x128xi32>
    %cst_132 = arith.constant -1.000000e+30 : f32
    %185 = vector.broadcast %cst_132 : f32 to vector<8x128xf32>
    %186 = arith.select %184, %181, %185 : vector<8x128xi1>, vector<8x128xf32>
    %cst_133 = arith.constant dense<0xFF800000> : vector<8xf32>
    %187 = vector.multi_reduction <maximumf>, %186, %cst_133 [1] : vector<8x128xf32> to vector<8xf32>
    %188 = vector.shape_cast %187 : vector<8xf32> to vector<8x1xf32>
    %189 = vector.broadcast %188 : vector<8x1xf32> to vector<8x128xf32>
    %190 = arith.subf %186, %189 : vector<8x128xf32>
    %191 = math.exp %190 : vector<8x128xf32>
    %cst_134 = arith.constant dense<0.000000e+00> : vector<8xf32>
    %192 = vector.multi_reduction <add>, %191, %cst_134 [1] : vector<8x128xf32> to vector<8xf32>
    %193 = vector.shape_cast %192 : vector<8xf32> to vector<8x1xf32>
    %194 = math.log %193 : vector<8x1xf32>
    %195 = arith.addf %188, %194 : vector<8x1xf32>
    %196 = vector.broadcast %195 : vector<8x1xf32> to vector<8x128xf32>
    %197 = arith.subf %186, %196 : vector<8x128xf32>
    %c0_135 = arith.constant 0 : index
    %c0_136 = arith.constant 0 : index
    %198 = vector.load %arg13[%c0_135, %c0_136] : memref<8x128xf32, #tpu.memory_space<vmem>>, vector<8x128xf32>
    tpu.vector_store %arg13[%c0_135, %c0_136], %197 {strides = array<i32>} : memref<8x128xf32, #tpu.memory_space<vmem>>, vector<8x128xf32>,
    return
  }
}

</mosaic_0001>

<bundles_post_ra>
// kernel: gin_classifier_forward.1
= control target key start
LH: loop header
LB: loop body
LE: loop exit
PB: predicated region body
PF: predicated region fallthrough
CT: control target
= control target key end

     0   :  { %vm4322_vm0 = vmmov 0   ;;  %s5034_s1 = inlined_call_operand.vmem [shape: f32[128,128], index: 1, kind: input, shape index: {}]   ;;  %s5035_s0 = inlined_call_operand.vmem [shape: bf16[128,128], index: 0, kind: input, shape index: {}]   ;;  %s5036_s2 = inlined_call_operand.vmem [shape: bf16[5,128,128], index: 2, kind: input, shape index: {}]   ;;  %s5037_s4 = inlined_call_operand.vmem [shape: bf16[5,128,128], index: 4, kind: input, shape index: {}]   ;;  %s5038_s3 = inlined_call_operand.vmem [shape: f32[5,1,128], index: 3, kind: input, shape index: {}]   ;;  %s5039_s5 = inlined_call_operand.vmem [shape: f32[5,1,128], index: 5, kind: input, shape index: {}]   ;;  %s5040_s6 = inlined_call_operand.vmem [shape: f32[5,1,128], index: 6, kind: input, shape index: {}]   ;;  %s5041_s7 = inlined_call_operand.vmem [shape: f32[5,1,128], index: 7, kind: input, shape index: {}]   ;;  %s5042_s9 = inlined_call_operand.vmem [shape: bf16[128,128], index: 9, kind: input, shape index: {}]   ;;  %s5043_s8 = inlined_call_operand.vmem [shape: bf16[8,128], index: 8, kind: input, shape index: {}]   ;;  %s5044_s11 = inlined_call_operand.vmem [shape: bf16[128,128], index: 11, kind: input, shape index: {}]   ;;  %s5045_s10 = inlined_call_operand.vmem [shape: f32[1,128], index: 10, kind: input, shape index: {}]   ;;  %s5046_s12 = inlined_call_operand.vmem [shape: f32[1,128], index: 12, kind: input, shape index: {}]   ;;  %s5047_s13 = inlined_call_operand.vmem [shape: f32[8,128], index: 13, kind: output, shape index: {}]  }
   0x1   :  { %v59_v0 = vld [vmem:[%s5034_s1 + $0x70] sm:$0xff]  ;;  %v60_v1 = vld [vmem:[%s5034_s1 + $0x78] sm:$0xff]  ;;  %v57_v2 = vld [vmem:[%s5034_s1 + $0x60] sm:$0xff] }
   0x2   :  { %v117_v3 = vpack.c.bf16 %v60_v1, %v59_v0  ;;  %v58_v4 = vld [vmem:[%s5034_s1 + $0x68] sm:$0xff]  ;;  %v55_v6 = vld [vmem:[%s5034_s1 + $0x50] sm:$0xff]  ;;  %v56_v7 = vld [vmem:[%s5034_s1 + $0x58] sm:$0xff] }
   0x3   :  { %v116_v5 = vpack.c.bf16 %v58_v4, %v57_v2  ;;  %v53_v8 = vld [vmem:[%s5034_s1 + $0x40] sm:$0xff]  ;;  %v115_v9 = vpack.c.bf16 %v56_v7, %v55_v6  ;;  %v54_v10 = vld [vmem:[%s5034_s1 + $0x48] sm:$0xff]  ;;  %v51_v12 = vld [vmem:[%s5034_s1 + $0x30] sm:$0xff] }
   0x4   :  { %3733 = vmatprep.subr.bf16.mxu0 %v117_v3  ;;  %v4420_v11 = vld [vmem:[%s5035_s0] sm:$0xff]   ;;  %v4207_v13 = vld [vmem:[%s5036_s2 + $0x38] sm:$0xff]   ;;  %v114_v14 = vpack.c.bf16 %v54_v10, %v53_v8  ;;  %v4208_v15 = vld [vmem:[%s5036_s2 + $0x30] sm:$0xff]  }
   0x5   :  { %3734 = vmatpush3.bf16.msra.mxu0 %v117_v3  ;;  %3749 = vmatprep.mubr.bf16.mxu0 %v4420_v11  ;;  %v52_v16 = vld [vmem:[%s5034_s1 + $0x38] sm:$0xff]  ;;  %v49_v17 = vld [vmem:[%s5034_s1 + $0x20] sm:$0xff]  ;;  %v4209_v18 = vld [vmem:[%s5036_s2 + $0x28] sm:$0xff]  }
   0x6   :  { %3735 = vmatprep.subr.bf16.mxu0 %v116_v5  ;;  %3765 = vmatprep.subr.bf16.mxu1 %v4207_v13  ;;  %v113_v19 = vpack.c.bf16 %v52_v16, %v51_v12  ;;  %v50_v20 = vld [vmem:[%s5034_s1 + $0x28] sm:$0xff]  ;;  %v4210_v21 = vld [vmem:[%s5036_s2 + $0x20] sm:$0xff]   ;;  %v47_v22 = vld [vmem:[%s5034_s1 + $0x10] sm:$0xff] }
   0x7   :  { %3766 = vmatpush3.bf16.msra.mxu1 %v4207_v13  ;;  %v48_v23 = vld [vmem:[%s5034_s1 + $0x18] sm:$0xff]  ;;  %v112_v24 = vpack.c.bf16 %v50_v20, %v49_v17  ;;  %v45_v26 = vld [vmem:[%s5034_s1] sm:$0xff]  ;;  %v46_v27 = vld [vmem:[%s5034_s1 + $0x8] sm:$0xff] }
   0x8   :  { %3767 = vmatprep.subr.bf16.mxu1 %v4208_v15  ;;  %v4211_v25 = vld [vmem:[%s5036_s2 + $0x18] sm:$0xff]   ;;  %v111_v28 = vpack.c.bf16 %v48_v23, %v47_v22  ;;  %v4212_v29 = vld [vmem:[%s5036_s2 + $0x10] sm:$0xff]   ;;  %v110_v30 = vpack.c.bf16 %v46_v27, %v45_v26  ;;  %v4468_v31 = vld [vmem:[%s5035_s0 + $0x8] sm:$0xff]  }
   0x9   :  { %3736 = vmatpush3.bf16.msra.mxu0 %v116_v5  ;;  %v4213_v32 = vld [vmem:[%s5036_s2 + $0x8] sm:$0xff]   ;;  %v4214_v33 = vld [vmem:[%s5036_s2] sm:$0xff]   ;;  %v4480_v34 = vld [vmem:[%s5035_s0 + $0x10] sm:$0xff]  }
   0xa   :  { %3737 = vmatprep.subr.bf16.mxu0 %v115_v9  ;;  %v4485_v35 = vld [vmem:[%s5035_s0 + $0x18] sm:$0xff]   ;;  %v4490_v36 = vld [vmem:[%s5035_s0 + $0x20] sm:$0xff]   ;;  %v4222_v38 = vld [vmem:[%s5037_s4 + $0x30] sm:$0xff]  }
   0xb   :  { %3768 = vmatpush3.bf16.msra.mxu1 %v4208_v15  ;;  %v4219_v37 = vld [vmem:[%s5037_s4 + $0x38] sm:$0xff]   ;;  %v4504_v39 = vld [vmem:[%s5035_s0 + $0x28] sm:$0xff]   ;;  %v4509_v40 = vld [vmem:[%s5035_s0 + $0x30] sm:$0xff]  }
   0xc   :  { %3769 = vmatprep.subr.bf16.mxu1 %v4209_v18  ;;  %v4223_v41 = vld [vmem:[%s5037_s4 + $0x28] sm:$0xff]   ;;  %v4224_v42 = vld [vmem:[%s5037_s4 + $0x20] sm:$0xff]   ;;  %v4225_v43 = vld [vmem:[%s5037_s4 + $0x18] sm:$0xff]  }
   0xd   :  { %3738 = vmatpush3.bf16.msra.mxu0 %v115_v9  ;;  %v4525_v44 = vld [vmem:[%s5035_s0 + $0x38] sm:$0xff]   ;;  %v4226_v51 = vld [vmem:[%s5037_s4 + $0x10] sm:$0xff]   ;;  %v4227_v52 = vld [vmem:[%s5037_s4 + $0x8] sm:$0xff]  }
   0xe   :  { %3739 = vmatprep.subr.bf16.mxu0 %v114_v14  ;;  %v4228_v53 = vld [vmem:[%s5037_s4] sm:$0xff]   ;;  %v4230_v26 = vld [vmem:[%s5036_s2 + $0x70] sm:$0xff]  }
   0xf   :  { %3770 = vmatpush3.bf16.msra.mxu1 %v4209_v18  ;;  %v4541_v10 = vld [vmem:[%s5038_s3] ss:$0 sm:$0xff] }
  0x10   :  { %3771 = vmatprep.subr.bf16.mxu1 %v4210_v21 }
  0x11   :  { %3740 = vmatpush3.bf16.msra.mxu0 %v114_v14 }
  0x12   :  { %3741 = vmatprep.subr.bf16.mxu0 %v113_v19 }
  0x13   :  { %3772 = vmatpush3.bf16.msra.mxu1 %v4210_v21 }
  0x14   :  { %3773 = vmatprep.subr.bf16.mxu1 %v4211_v25 }
  0x15   :  { %3742 = vmatpush3.bf16.msra.mxu0 %v113_v19 }
  0x16   :  { %3743 = vmatprep.subr.bf16.mxu0 %v112_v24 }
  0x17   :  { %3774 = vmatpush3.bf16.msra.mxu1 %v4211_v25  ;;  %v4229_v25 = vld [vmem:[%s5036_s2 + $0x78] sm:$0xff]  }
  0x18   :  { %3775 = vmatprep.subr.bf16.mxu1 %v4212_v29 }
  0x19   :  { %3744 = vmatpush3.bf16.msra.mxu0 %v112_v24 }
  0x1a   :  { %3745 = vmatprep.subr.bf16.mxu0 %v111_v28 }
  0x1b   :  { %3776 = vmatpush3.bf16.msra.mxu1 %v4212_v29 }
  0x1c   :  { %3777 = vmatprep.subr.bf16.mxu1 %v4213_v32 }
  0x1d   :  { %3746 = vmatpush3.bf16.msra.mxu0 %v111_v28 }
  0x1e   :  { %3747 = vmatprep.subr.bf16.mxu0 %v110_v30 }
  0x1f   :  { %3778 = vmatpush3.bf16.msra.mxu1 %v4213_v32  ;;  %v4231_v32 = vld [vmem:[%s5036_s2 + $0x68] sm:$0xff]  }
  0x20   :  { %3779 = vmatprep.subr.bf16.mxu1 %v4214_v33 }
  0x21   :  { %3748 = vmatpush3.bf16.msra.mxu0 %v110_v30 }
  0x22   :  { %3797 = vmatprep.subr.bf16.mxu0 %v4219_v37 }
  0x23   :  { %3780 = vmatpush3.bf16.msra.mxu1 %v4214_v33 }
  0x24   :  { %3750 = vmatmul.mubr.bf16.vlgmr.msra.gmra.mxu0 %v4468_v31 }
  0x25   :  { %3753 = vmatprep.mubr.bf16.mxu0 %v4480_v34  ;;  %3798 = vmatpush3.bf16.msra.mxu0 %v4219_v37 }
  0x26   :  { %3799 = vmatprep.subr.bf16.mxu0 %v4222_v38 }
  0x29   :  { %3800 = vmatpush3.bf16.msra.mxu0 %v4222_v38 }
  0x2a   :  { %3801 = vmatprep.subr.bf16.mxu0 %v4223_v41 }
  0x2c   :  { %3754 = vmatmul.mubr.bf16.gmra.mxu0 %v4485_v35 }
  0x2d   :  { %3757 = vmatprep.mubr.bf16.mxu0 %v4490_v36  ;;  %3802 = vmatpush3.bf16.msra.mxu0 %v4223_v41 }
  0x2e   :  { %3803 = vmatprep.subr.bf16.mxu0 %v4224_v42 }
  0x31   :  { %3804 = vmatpush3.bf16.msra.mxu0 %v4224_v42 }
  0x32   :  { %3805 = vmatprep.subr.bf16.mxu0 %v4225_v43 }
  0x34   :  { %3758 = vmatmul.mubr.bf16.gmra.mxu0 %v4504_v39 }
  0x35   :  { %3761 = vmatprep.mubr.bf16.mxu0 %v4509_v40  ;;  %3806 = vmatpush3.bf16.msra.mxu0 %v4225_v43 }
  0x36   :  { %3807 = vmatprep.subr.bf16.mxu0 %v4226_v51 }
  0x39   :  { %3808 = vmatpush3.bf16.msra.mxu0 %v4226_v51 }
  0x3a   :  { %3809 = vmatprep.subr.bf16.mxu0 %v4227_v52 }
  0x3c   :  { %3762 = vmatmul.mubr.bf16.gmra.mxu0 %v4525_v44 }
  0x3d   :  { %3810 = vmatpush3.bf16.msra.mxu0 %v4227_v52 }
  0x3e   :  { %3811 = vmatprep.subr.bf16.mxu0 %v4228_v53 }
  0x41   :  { %3812 = vmatpush3.bf16.msra.mxu0 %v4228_v53 }
  0x42   :  { %3847 = vmatprep.subr.bf16.mxu0 %v4229_v25 }
  0xe4   :  { %v3751_v45 = vpop.f32.mrf.mxu0 }
  0xe6   :  { %v200_v46 = vpop.f32.mrf.mxu0 }
  0xe8   :  { %v3752_v47 = vpop.f32.mrf.mxu0 }
  0xe9   :  { %v264_v50 = vpack.c.bf16 %v3752_v47, %v3751_v45 }
  0xea   :  { %v203_v48 = vpop.f32.mrf.mxu0 }
  0xeb   :  { %v263_v49 = vpack.c.bf16 %v203_v48, %v200_v46  ;;  %v4232_v46 = vld [vmem:[%s5036_s2 + $0x60] sm:$0xff]  }
  0xec   :  { %v3755_v54 = vpop.f32.mrf.mxu0 }
  0xed   :  { %3781 = vmatprep.mubr.bf16.mxu1 %v263_v49 }
  0xee   :  { %3782 = vmatmul.mubr.bf16.vlgmr.msra.gmra.mxu1 %v264_v50  ;;  %v216_v55 = vpop.f32.mrf.mxu0 }
  0xf0   :  { %v3756_v56 = vpop.f32.mrf.mxu0 }
  0xf1   :  { %v266_v57 = vpack.c.bf16 %v3756_v56, %v3755_v54  ;;  %v4233_v54 = vld [vmem:[%s5036_s2 + $0x58] sm:$0xff]  }
  0xf2   :  { %v219_v58 = vpop.f32.mrf.mxu0 }
  0xf3   :  { %v265_v59 = vpack.c.bf16 %v219_v58, %v216_v55 }
  0xf4   :  { %v3759_v60 = vpop.f32.mrf.mxu0 }
  0xf5   :  { %3785 = vmatprep.mubr.bf16.mxu1 %v265_v59 }
  0xf6   :  { %v232_v61 = vpop.f32.mrf.mxu0  ;;  %3786 = vmatmul.mubr.bf16.gmra.mxu1 %v266_v57 }
  0xf8   :  { %v3760_v62 = vpop.f32.mrf.mxu0 }
  0xf9   :  { %v268_v63 = vpack.c.bf16 %v3760_v62, %v3759_v60  ;;  %v4234_v62 = vld [vmem:[%s5036_s2 + $0x50] sm:$0xff]  }
  0xfa   :  { %v235_v0 = vpop.f32.mrf.mxu0 }
  0xfb   :  { %v267_v1 = vpack.c.bf16 %v235_v0, %v232_v61 }
  0xfc   :  { %v3763_v2 = vpop.f32.mrf.mxu0 }
  0xfd   :  { %3789 = vmatprep.mubr.bf16.mxu1 %v267_v1 }
  0xfe   :  { %v248_v3 = vpop.f32.mrf.mxu0  ;;  %3790 = vmatmul.mubr.bf16.gmra.mxu1 %v268_v63 }
 0x100   :  { %v3764_v4 = vpop.f32.mrf.mxu0 }
 0x101   :  { %v270_v5 = vpack.c.bf16 %v3764_v4, %v3763_v2 }
 0x102   :  { %v251_v6 = vpop.f32.mrf.mxu0 }
 0x103   :  { %v269_v7 = vpack.c.bf16 %v251_v6, %v248_v3 }
 0x105   :  { %3793 = vmatprep.mubr.bf16.mxu1 %v269_v7 }
 0x106   :  { %3794 = vmatmul.mubr.bf16.gmra.mxu1 %v270_v5 }
 0x107   :  { %3831 = vmatprep.mubr.bf16.mxu1 %v4420_v11 }
 0x1ae   :  { %v3783_v8 = vpop.f32.mrf.mxu1 }
 0x1af   :  { %v385_v15 = vadd.f32 %v3783_v8, %v4541_v10 }
 0x1b0   :  { %v376_v9 = vpop.f32.mrf.mxu1 }
 0x1b1   :  { %v377_v13 = vadd.f32 %v4541_v10, %v376_v9  ;;  %v441_v21 = vmax.f32 %v385_v15, 0.0 }
 0x1b2   :  { %v3784_v12 = vpop.f32.mrf.mxu1 }
 0x1b3   :  { %v388_v14 = vadd.f32 %v3784_v12, %v4541_v10  ;;  %v439_v19 = vmax.f32 %v377_v13, 0.0 }
 0x1b4   :  { %v379_v16 = vpop.f32.mrf.mxu1 }
 0x1b5   :  { %v380_v17 = vadd.f32 %v4541_v10, %v379_v16  ;;  %v442_v18 = vmax.f32 %v388_v14, 0.0 }
 0x1b6   :  { %v3787_v24 = vpop.f32.mrf.mxu1 }
 0x1b7   :  { %v440_v20 = vmax.f32 %v380_v17, 0.0  ;;  %v456_v23 = vpack.c.bf16 %v442_v18, %v441_v21  ;;  %v401_v27 = vadd.f32 %v3787_v24, %v4541_v10  ;;  %v3248_v18 = vld [vmem:[%s5039_s5] ss:$0 sm:$0xff] }
 0x1b8   :  { %v392_v28 = vpop.f32.mrf.mxu1 }
 0x1b9   :  { %v455_v22 = vpack.c.bf16 %v440_v20, %v439_v19  ;;  %v393_v29 = vadd.f32 %v4541_v10, %v392_v28  ;;  %v445_v37 = vmax.f32 %v401_v27, 0.0  ;;  %v3258_v27 = vld [vmem:[%s5041_s7] ss:$0 sm:$0xff] }
 0x1ba   :  { %v3788_v30 = vpop.f32.mrf.mxu1 }
 0x1bb   :  { %3813 = vmatprep.mubr.bf16.mxu0 %v455_v22  ;;  %v404_v33 = vadd.f32 %v3788_v30, %v4541_v10  ;;  %v443_v41 = vmax.f32 %v393_v29, 0.0 }
 0x1bc   :  { %3814 = vmatmul.mubr.bf16.vlgmr.msra.gmra.mxu0 %v456_v23  ;;  %v395_v38 = vpop.f32.mrf.mxu1  ;;  %v3257_v23 = vld [vmem:[%s5040_s6] ss:$0 sm:$0xff] }
 0x1bd   :  { %3848 = vmatpush3.bf16.msra.mxu0 %v4229_v25  ;;  %v446_v42 = vmax.f32 %v404_v33, 0.0  ;;  %v396_v43 = vadd.f32 %v4541_v10, %v395_v38  ;;  %v4235_v33 = vld [vmem:[%s5036_s2 + $0x48] sm:$0xff]   ;;  %v4237_v38 = vld [vmem:[%s5037_s4 + $0x78] sm:$0xff]  }
 0x1be   :  { %3849 = vmatprep.subr.bf16.mxu0 %v4230_v26  ;;  %v3791_v45 = vpop.f32.mrf.mxu1 }
 0x1bf   :  { %v444_v47 = vmax.f32 %v396_v43, 0.0  ;;  %v458_v48 = vpack.c.bf16 %v446_v42, %v445_v37  ;;  %v417_v49 = vadd.f32 %v3791_v45, %v4541_v10  ;;  %v4236_v37 = vld [vmem:[%s5036_s2 + $0x40] sm:$0xff]   ;;  %v4239_v43 = vld [vmem:[%s5037_s4 + $0x68] sm:$0xff]  }
 0x1c0   :  { %v408_v50 = vpop.f32.mrf.mxu1 }
 0x1c1   :  { %3850 = vmatpush3.bf16.msra.mxu0 %v4230_v26  ;;  %v409_v51 = vadd.f32 %v4541_v10, %v408_v50  ;;  %v457_v52 = vpack.c.bf16 %v444_v47, %v443_v41  ;;  %v449_v56 = vmax.f32 %v417_v49, 0.0  ;;  %v4238_v41 = vld [vmem:[%s5037_s4 + $0x70] sm:$0xff]   ;;  %v4240_v47 = vld [vmem:[%s5037_s4 + $0x60] sm:$0xff]   ;;  %v4241_v50 = vld [vmem:[%s5037_s4 + $0x58] sm:$0xff]  }
 0x1c2   :  { %3851 = vmatprep.subr.bf16.mxu0 %v4231_v32  ;;  %v3792_v53 = vpop.f32.mrf.mxu1 }
 0x1c3   :  { %v420_v55 = vadd.f32 %v3792_v53, %v4541_v10  ;;  %3817 = vmatprep.mubr.bf16.mxu0 %v457_v52  ;;  %v447_v58 = vmax.f32 %v409_v51, 0.0 }
 0x1c4   :  { %v411_v57 = vpop.f32.mrf.mxu1  ;;  %3818 = vmatmul.mubr.bf16.gmra.mxu0 %v458_v48 }
 0x1c5   :  { %3852 = vmatpush3.bf16.msra.mxu0 %v4231_v32  ;;  %v450_v59 = vmax.f32 %v420_v55, 0.0  ;;  %v412_v60 = vadd.f32 %v4541_v10, %v411_v57 }
 0x1c6   :  { %3853 = vmatprep.subr.bf16.mxu0 %v4232_v46  ;;  %v3795_v61 = vpop.f32.mrf.mxu1 }
 0x1c7   :  { %v448_v63 = vmax.f32 %v412_v60, 0.0  ;;  %v460_v0 = vpack.c.bf16 %v450_v59, %v449_v56  ;;  %v433_v1 = vadd.f32 %v3795_v61, %v4541_v10 }
 0x1c8   :  { %v424_v2 = vpop.f32.mrf.mxu1 }
 0x1c9   :  { %3854 = vmatpush3.bf16.msra.mxu0 %v4232_v46  ;;  %v459_v3 = vpack.c.bf16 %v448_v63, %v447_v58  ;;  %v425_v4 = vadd.f32 %v4541_v10, %v424_v2  ;;  %v453_v7 = vmax.f32 %v433_v1, 0.0  ;;  %v4243_v1 = vld [vmem:[%s5037_s4 + $0x48] sm:$0xff]   ;;  %v4244_v2 = vld [vmem:[%s5037_s4 + $0x40] sm:$0xff]  }
 0x1ca   :  { %3855 = vmatprep.subr.bf16.mxu0 %v4233_v54  ;;  %v3796_v5 = vpop.f32.mrf.mxu1 }
 0x1cb   :  { %v436_v6 = vadd.f32 %v3796_v5, %v4541_v10  ;;  %3821 = vmatprep.mubr.bf16.mxu0 %v459_v3  ;;  %v451_v9 = vmax.f32 %v425_v4, 0.0 }
 0x1cc   :  { %v427_v8 = vpop.f32.mrf.mxu1  ;;  %3822 = vmatmul.mubr.bf16.gmra.mxu0 %v460_v0  ;;  %v4242_v0 = vld [vmem:[%s5037_s4 + $0x50] sm:$0xff]  }
 0x1cd   :  { %3856 = vmatpush3.bf16.msra.mxu0 %v4233_v54  ;;  %v454_v12 = vmax.f32 %v436_v6, 0.0  ;;  %v428_v13 = vadd.f32 %v4541_v10, %v427_v8 }
 0x1ce   :  { %3857 = vmatprep.subr.bf16.mxu0 %v4234_v62 }
 0x1cf   :  { %v452_v14 = vmax.f32 %v428_v13, 0.0  ;;  %v462_v15 = vpack.c.bf16 %v454_v12, %v453_v7 }
 0x1d1   :  { %3858 = vmatpush3.bf16.msra.mxu0 %v4234_v62  ;;  %v461_v16 = vpack.c.bf16 %v452_v14, %v451_v9 }
 0x1d2   :  { %3859 = vmatprep.subr.bf16.mxu0 %v4235_v33 }
 0x1d3   :  { %3825 = vmatprep.mubr.bf16.mxu0 %v461_v16 }
 0x1d4   :  { %3826 = vmatmul.mubr.bf16.gmra.mxu0 %v462_v15 }
 0x1d5   :  { %3860 = vmatpush3.bf16.msra.mxu0 %v4235_v33 }
 0x1d6   :  { %3861 = vmatprep.subr.bf16.mxu0 %v4236_v37 }
 0x1d9   :  { %3862 = vmatpush3.bf16.msra.mxu0 %v4236_v37 }
 0x27c   :  { %v3815_v17 = vpop.f32.mrf.mxu0 }
 0x27e   :  { %v568_v19 = vpop.f32.mrf.mxu0 }
 0x27f   :  { %v569_v20 = vadd.f32 %v3248_v18, %v568_v19 }
 0x280   :  { %v3816_v21 = vpop.f32.mrf.mxu0 }
 0x281   :  { %v631_v22 = vmax.f32 %v569_v20, 0.0 }
 0x282   :  { %v571_v10 = vpop.f32.mrf.mxu0 }
 0x283   :  { %v572_v24 = vadd.f32 %v3248_v18, %v571_v10  ;;  %v654_v25 = vmul.f32 %v3257_v23, %v631_v22 }
 0x284   :  { %v3819_v42 = vpop.f32.mrf.mxu0 }
 0x285   :  { %v632_v26 = vmax.f32 %v572_v24, 0.0  ;;  %v677_v29 = vadd.f32 %v3258_v27, %v654_v25  ;;  %v4627_v24 = vld [vmem:[%s5038_s3 + $0x1] ss:$0 sm:$0xff] }
 0x286   :  { %v584_v45 = vpop.f32.mrf.mxu0 }
 0x287   :  { %v655_v28 = vmul.f32 %v3257_v23, %v632_v26  ;;  %v4246_v45 = vld [vmem:[%s5036_s2 + $0xb0] sm:$0xff]  }
 0x288   :  { %v3820_v46 = vpop.f32.mrf.mxu0 }
 0x289   :  { %v678_v30 = vadd.f32 %v3258_v27, %v655_v28 }
 0x28a   :  { %v587_v48 = vpop.f32.mrf.mxu0 }
 0x28b   :  { %v709_v32 = vpack.c.bf16 %v678_v30, %v677_v29 }
 0x28c   :  { %v3823_v49 = vpop.f32.mrf.mxu0 }
 0x28d   :  { %3829 = vmatprep.subr.bf16.mxu1 %v709_v32 }
 0x28e   :  { %3830 = vmatpush3.bf16.msra.mxu1 %v709_v32  ;;  %v600_v51 = vpop.f32.mrf.mxu0 }
 0x28f   :  { %3879 = vmatprep.subr.bf16.mxu1 %v4237_v38 }
 0x290   :  { %v3824_v52 = vpop.f32.mrf.mxu0 }
 0x291   :  { %3832 = vmatmul.mubr.bf16.vlgmr.msra.gmra.mxu1 %v4468_v31 }
 0x292   :  { %3835 = vmatprep.mubr.bf16.mxu1 %v4480_v34  ;;  %3880 = vmatpush3.bf16.msra.mxu1 %v4237_v38  ;;  %v603_v53 = vpop.f32.mrf.mxu0 }
 0x293   :  { %3881 = vmatprep.subr.bf16.mxu1 %v4238_v41 }
 0x294   :  { %v3827_v54 = vpop.f32.mrf.mxu0 }
 0x296   :  { %3882 = vmatpush3.bf16.msra.mxu1 %v4238_v41  ;;  %v616_v55 = vpop.f32.mrf.mxu0 }
 0x297   :  { %3883 = vmatprep.subr.bf16.mxu1 %v4239_v43 }
 0x298   :  { %v3828_v56 = vpop.f32.mrf.mxu0 }
 0x299   :  { %3836 = vmatmul.mubr.bf16.gmra.mxu1 %v4485_v35 }
 0x29a   :  { %3839 = vmatprep.mubr.bf16.mxu1 %v4490_v36  ;;  %3884 = vmatpush3.bf16.msra.mxu1 %v4239_v43  ;;  %v619_v57 = vpop.f32.mrf.mxu0  ;;  %v4245_v43 = vld [vmem:[%s5036_s2 + $0xb8] sm:$0xff]  }
 0x29b   :  { %3885 = vmatprep.subr.bf16.mxu1 %v4240_v47 }
 0x29e   :  { %3886 = vmatpush3.bf16.msra.mxu1 %v4240_v47 }
 0x29f   :  { %3887 = vmatprep.subr.bf16.mxu1 %v4241_v50 }
 0x2a1   :  { %3840 = vmatmul.mubr.bf16.gmra.mxu1 %v4504_v39 }
 0x2a2   :  { %3843 = vmatprep.mubr.bf16.mxu1 %v4509_v40  ;;  %3888 = vmatpush3.bf16.msra.mxu1 %v4241_v50  ;;  %v4247_v50 = vld [vmem:[%s5036_s2 + $0xa8] sm:$0xff]  }
 0x2a3   :  { %3889 = vmatprep.subr.bf16.mxu1 %v4242_v0 }
 0x2a6   :  { %3890 = vmatpush3.bf16.msra.mxu1 %v4242_v0 }
 0x2a7   :  { %3891 = vmatprep.subr.bf16.mxu1 %v4243_v1 }
 0x2a9   :  { %3844 = vmatmul.mubr.bf16.gmra.mxu1 %v4525_v44 }
 0x2aa   :  { %3892 = vmatpush3.bf16.msra.mxu1 %v4243_v1 }
 0x2ab   :  { %3893 = vmatprep.subr.bf16.mxu1 %v4244_v2 }
 0x2ae   :  { %3894 = vmatpush3.bf16.msra.mxu1 %v4244_v2  ;;  %v4249_v2 = vld [vmem:[%s5036_s2 + $0x98] sm:$0xff]  }
 0x2af   :  { %3929 = vmatprep.subr.bf16.mxu1 %v4245_v43 }
 0x351   :  { %v3833_v58 = vpop.f32.mrf.mxu1 }
 0x353   :  { %v751_v59 = vpop.f32.mrf.mxu1 }
 0x355   :  { %v3834_v60 = vpop.f32.mrf.mxu1 }
 0x356   :  { %v815_v63 = vpack.c.bf16 %v3834_v60, %v3833_v58  ;;  %v4248_v58 = vld [vmem:[%s5036_s2 + $0xa0] sm:$0xff]  }
 0x357   :  { %v754_v61 = vpop.f32.mrf.mxu1 }
 0x358   :  { %v814_v62 = vpack.c.bf16 %v754_v61, %v751_v59 }
 0x359   :  { %v3837_v3 = vpop.f32.mrf.mxu1 }
 0x35a   :  { %3863 = vmatprep.mubr.bf16.mxu0 %v814_v62 }
 0x35b   :  { %3864 = vmatmul.mubr.bf16.vlgmr.msra.gmra.mxu0 %v815_v63  ;;  %v767_v4 = vpop.f32.mrf.mxu1 }
 0x35d   :  { %v3838_v5 = vpop.f32.mrf.mxu1 }
 0x35e   :  { %v817_v6 = vpack.c.bf16 %v3838_v5, %v3837_v3 }
 0x35f   :  { %v770_v7 = vpop.f32.mrf.mxu1 }
 0x360   :  { %v816_v8 = vpack.c.bf16 %v770_v7, %v767_v4 }
 0x361   :  { %v3841_v9 = vpop.f32.mrf.mxu1 }
 0x362   :  { %3867 = vmatprep.mubr.bf16.mxu0 %v816_v8 }
 0x363   :  { %v783_v12 = vpop.f32.mrf.mxu1  ;;  %3868 = vmatmul.mubr.bf16.gmra.mxu0 %v817_v6 }
 0x365   :  { %v3842_v13 = vpop.f32.mrf.mxu1 }
 0x366   :  { %v819_v14 = vpack.c.bf16 %v3842_v13, %v3841_v9 }
 0x367   :  { %v786_v15 = vpop.f32.mrf.mxu1 }
 0x368   :  { %v818_v16 = vpack.c.bf16 %v786_v15, %v783_v12  ;;  %v4250_v12 = vld [vmem:[%s5036_s2 + $0x90] sm:$0xff]  }
 0x369   :  { %v3845_v17 = vpop.f32.mrf.mxu1 }
 0x36a   :  { %3871 = vmatprep.mubr.bf16.mxu0 %v818_v16 }
 0x36b   :  { %v799_v18 = vpop.f32.mrf.mxu1  ;;  %3872 = vmatmul.mubr.bf16.gmra.mxu0 %v819_v14 }
 0x36d   :  { %v3846_v19 = vpop.f32.mrf.mxu1 }
 0x36e   :  { %v821_v20 = vpack.c.bf16 %v3846_v19, %v3845_v17 }
 0x36f   :  { %v802_v21 = vpop.f32.mrf.mxu1 }
 0x370   :  { %v820_v22 = vpack.c.bf16 %v802_v21, %v799_v18 }
 0x372   :  { %3875 = vmatprep.mubr.bf16.mxu0 %v820_v22 }
 0x373   :  { %3876 = vmatmul.mubr.bf16.gmra.mxu0 %v821_v20 }
 0x374   :  { %3913 = vmatprep.mubr.bf16.mxu0 %v4420_v11 }
 0x41b   :  { %v3865_v23 = vpop.f32.mrf.mxu0 }
 0x41c   :  { %v938_v28 = vadd.f32 %v3865_v23, %v4627_v24 }
 0x41d   :  { %v929_v10 = vpop.f32.mrf.mxu0 }
 0x41e   :  { %v930_v26 = vadd.f32 %v4627_v24, %v929_v10  ;;  %v994_v37 = vmax.f32 %v938_v28, 0.0 }
 0x41f   :  { %v3866_v25 = vpop.f32.mrf.mxu0 }
 0x420   :  { %v941_v27 = vadd.f32 %v3866_v25, %v4627_v24  ;;  %v992_v33 = vmax.f32 %v930_v26, 0.0 }
 0x421   :  { %v932_v29 = vpop.f32.mrf.mxu0 }
 0x422   :  { %v933_v30 = vadd.f32 %v4627_v24, %v932_v29  ;;  %v995_v32 = vmax.f32 %v941_v27, 0.0 }
 0x423   :  { %v3869_v42 = vpop.f32.mrf.mxu0 }
 0x424   :  { %v993_v11 = vmax.f32 %v933_v30, 0.0  ;;  %v1009_v41 = vpack.c.bf16 %v995_v32, %v994_v37  ;;  %v954_v46 = vadd.f32 %v3869_v42, %v4627_v24  ;;  %v3302_v30 = vld [vmem:[%s5039_s5 + $0x1] ss:$0 sm:$0xff] }
 0x425   :  { %v945_v47 = vpop.f32.mrf.mxu0 }
 0x426   :  { %v1008_v38 = vpack.c.bf16 %v993_v11, %v992_v33  ;;  %v946_v48 = vadd.f32 %v4627_v24, %v945_v47  ;;  %v998_v52 = vmax.f32 %v954_v46, 0.0 }
 0x427   :  { %v3870_v49 = vpop.f32.mrf.mxu0 }
 0x428   :  { %3895 = vmatprep.mubr.bf16.mxu1 %v1008_v38  ;;  %v957_v51 = vadd.f32 %v3870_v49, %v4627_v24  ;;  %v996_v54 = vmax.f32 %v946_v48, 0.0  ;;  %v3312_v38 = vld [vmem:[%s5040_s6 + $0x1] ss:$0 sm:$0xff] }
 0x429   :  { %3896 = vmatmul.mubr.bf16.vlgmr.msra.gmra.mxu1 %v1009_v41  ;;  %v948_v53 = vpop.f32.mrf.mxu0 }
 0x42a   :  { %3930 = vmatpush3.bf16.msra.mxu1 %v4245_v43  ;;  %v999_v55 = vmax.f32 %v957_v51, 0.0  ;;  %v949_v56 = vadd.f32 %v4627_v24, %v948_v53  ;;  %v4256_v51 = vld [vmem:[%s5037_s4 + $0xa0] sm:$0xff]  }
 0x42b   :  { %3931 = vmatprep.subr.bf16.mxu1 %v4246_v45  ;;  %v3873_v57 = vpop.f32.mrf.mxu0 }
 0x42c   :  { %v997_v59 = vmax.f32 %v949_v56, 0.0  ;;  %v1011_v60 = vpack.c.bf16 %v999_v55, %v998_v52  ;;  %v970_v61 = vadd.f32 %v3873_v57, %v4627_v24 }
 0x42d   :  { %v961_v62 = vpop.f32.mrf.mxu0 }
 0x42e   :  { %3932 = vmatpush3.bf16.msra.mxu1 %v4246_v45  ;;  %v1010_v63 = vpack.c.bf16 %v997_v59, %v996_v54  ;;  %v962_v0 = vadd.f32 %v4627_v24, %v961_v62  ;;  %v1002_v4 = vmax.f32 %v970_v61, 0.0  ;;  %v3314_v45 = vld [vmem:[%s5041_s7 + $0x1] ss:$0 sm:$0xff]  ;;  %v4257_v54 = vld [vmem:[%s5037_s4 + $0x98] sm:$0xff]  }
 0x42f   :  { %3933 = vmatprep.subr.bf16.mxu1 %v4247_v50  ;;  %v3874_v1 = vpop.f32.mrf.mxu0 }
 0x430   :  { %v973_v3 = vadd.f32 %v3874_v1, %v4627_v24  ;;  %3899 = vmatprep.mubr.bf16.mxu1 %v1010_v63  ;;  %v1000_v6 = vmax.f32 %v962_v0, 0.0 }
 0x431   :  { %v964_v5 = vpop.f32.mrf.mxu0  ;;  %3900 = vmatmul.mubr.bf16.gmra.mxu1 %v1011_v60 }
 0x432   :  { %3934 = vmatpush3.bf16.msra.mxu1 %v4247_v50  ;;  %v1003_v7 = vmax.f32 %v973_v3, 0.0  ;;  %v965_v8 = vadd.f32 %v4627_v24, %v964_v5  ;;  %v4251_v50 = vld [vmem:[%s5036_s2 + $0x88] sm:$0xff]  }
 0x433   :  { %3935 = vmatprep.subr.bf16.mxu1 %v4248_v58  ;;  %v3877_v9 = vpop.f32.mrf.mxu0  ;;  %v4259_v5 = vld [vmem:[%s5037_s4 + $0x88] sm:$0xff]  }
 0x434   :  { %v1001_v13 = vmax.f32 %v965_v8, 0.0  ;;  %v1013_v14 = vpack.c.bf16 %v1003_v7, %v1002_v4  ;;  %v986_v15 = vadd.f32 %v3877_v9, %v4627_v24  ;;  %v4258_v4 = vld [vmem:[%s5037_s4 + $0x90] sm:$0xff]  }
 0x435   :  { %v977_v16 = vpop.f32.mrf.mxu0 }
 0x436   :  { %3936 = vmatpush3.bf16.msra.mxu1 %v4248_v58  ;;  %v1012_v17 = vpack.c.bf16 %v1001_v13, %v1000_v6  ;;  %v978_v18 = vadd.f32 %v4627_v24, %v977_v16  ;;  %v1006_v21 = vmax.f32 %v986_v15, 0.0  ;;  %v4260_v6 = vld [vmem:[%s5037_s4 + $0x80] sm:$0xff]  }
 0x437   :  { %3937 = vmatprep.subr.bf16.mxu1 %v4249_v2  ;;  %v3878_v19 = vpop.f32.mrf.mxu0 }
 0x438   :  { %v989_v20 = vadd.f32 %v3878_v19, %v4627_v24  ;;  %3903 = vmatprep.mubr.bf16.mxu1 %v1012_v17  ;;  %v1004_v23 = vmax.f32 %v978_v18, 0.0 }
 0x439   :  { %v980_v22 = vpop.f32.mrf.mxu0  ;;  %3904 = vmatmul.mubr.bf16.gmra.mxu1 %v1013_v14 }
 0x43a   :  { %3938 = vmatpush3.bf16.msra.mxu1 %v4249_v2  ;;  %v1007_v10 = vmax.f32 %v989_v20, 0.0  ;;  %v981_v25 = vadd.f32 %v4627_v24, %v980_v22 }
 0x43b   :  { %3939 = vmatprep.subr.bf16.mxu1 %v4250_v12 }
 0x43c   :  { %v1005_v26 = vmax.f32 %v981_v25, 0.0  ;;  %v1015_v27 = vpack.c.bf16 %v1007_v10, %v1006_v21 }
 0x43e   :  { %3940 = vmatpush3.bf16.msra.mxu1 %v4250_v12  ;;  %v1014_v28 = vpack.c.bf16 %v1005_v26, %v1004_v23 }
 0x43f   :  { %3941 = vmatprep.subr.bf16.mxu1 %v4251_v50 }
 0x440   :  { %3907 = vmatprep.mubr.bf16.mxu1 %v1014_v28 }
 0x441   :  { %3908 = vmatmul.mubr.bf16.gmra.mxu1 %v1015_v27  ;;  %v4712_v27 = vld [vmem:[%s5035_s0] sm:$0xff]  }
 0x442   :  { %3942 = vmatpush3.bf16.msra.mxu1 %v4251_v50  ;;  %v4262_v50 = vld [vmem:[%s5036_s2 + $0xf0] sm:$0xff]  }
 0x4e9   :  { %v3897_v29 = vpop.f32.mrf.mxu1 }
 0x4eb   :  { %v1123_v32 = vpop.f32.mrf.mxu1 }
 0x4ec   :  { %v1124_v33 = vadd.f32 %v3302_v30, %v1123_v32 }
 0x4ed   :  { %v3898_v11 = vpop.f32.mrf.mxu1 }
 0x4ee   :  { %v1186_v37 = vmax.f32 %v1124_v33, 0.0 }
 0x4ef   :  { %v1126_v24 = vpop.f32.mrf.mxu1 }
 0x4f0   :  { %v1127_v41 = vadd.f32 %v3302_v30, %v1126_v24  ;;  %v1210_v42 = vmul.f32 %v3312_v38, %v1186_v37  ;;  %v4718_v30 = vld [vmem:[%s5038_s3 + $0x2] ss:$0 sm:$0xff] }
 0x4f2   :  { %v1187_v43 = vmax.f32 %v1127_v41, 0.0  ;;  %v1234_v47 = vadd.f32 %v3314_v45, %v1210_v42 }
 0x4f4   :  { %v1211_v46 = vmul.f32 %v3312_v38, %v1187_v43 }
 0x4f6   :  { %v1235_v48 = vadd.f32 %v3314_v45, %v1211_v46 }
 0x4f8   :  { %v1266_v49 = vpack.c.bf16 %v1235_v48, %v1234_v47 }
 0x4fa   :  { %3911 = vmatprep.subr.bf16.mxu0 %v1266_v49 }
 0x4fb   :  { %3912 = vmatpush3.bf16.msra.mxu0 %v1266_v49  ;;  %v4261_v49 = vld [vmem:[%s5036_s2 + $0xf8] sm:$0xff]  }
 0x4fe   :  { %3914 = vmatmul.mubr.bf16.vlgmr.msra.gmra.mxu0 %v4468_v31  ;;  %v4252_v31 = vld [vmem:[%s5036_s2 + $0x80] sm:$0xff]  }
 0x4ff   :  { %3917 = vmatprep.mubr.bf16.mxu0 %v4480_v34  ;;  %3943 = vmatprep.subr.bf16.mxu1 %v4252_v31  ;;  %v4253_v34 = vld [vmem:[%s5037_s4 + $0xb8] sm:$0xff]  }
 0x500   :  { %3944 = vmatpush3.bf16.msra.mxu1 %v4252_v31  ;;  %3961 = vmatprep.subr.bf16.mxu0 %v4253_v34 }
 0x501   :  { %3962 = vmatpush3.bf16.msra.mxu0 %v4253_v34 }
 0x506   :  { %3918 = vmatmul.mubr.bf16.gmra.mxu0 %v4485_v35  ;;  %v4254_v35 = vld [vmem:[%s5037_s4 + $0xb0] sm:$0xff]  }
 0x507   :  { %3921 = vmatprep.mubr.bf16.mxu0 %v4490_v36  ;;  %v3901_v36 = vpop.f32.mrf.mxu1  ;;  %3963 = vmatprep.subr.bf16.mxu0 %v4254_v35 }
 0x508   :  { %3964 = vmatpush3.bf16.msra.mxu0 %v4254_v35 }
 0x50e   :  { %3922 = vmatmul.mubr.bf16.gmra.mxu0 %v4504_v39  ;;  %v4255_v39 = vld [vmem:[%s5037_s4 + $0xa8] sm:$0xff]  }
 0x50f   :  { %3925 = vmatprep.mubr.bf16.mxu0 %v4509_v40  ;;  %v1139_v40 = vpop.f32.mrf.mxu1  ;;  %3965 = vmatprep.subr.bf16.mxu0 %v4255_v39 }
 0x510   :  { %3966 = vmatpush3.bf16.msra.mxu0 %v4255_v39  ;;  %v4263_v39 = vld [vmem:[%s5036_s2 + $0xe8] sm:$0xff]  }
 0x511   :  { %3967 = vmatprep.subr.bf16.mxu0 %v4256_v51 }
 0x514   :  { %3968 = vmatpush3.bf16.msra.mxu0 %v4256_v51 }
 0x515   :  { %3969 = vmatprep.subr.bf16.mxu0 %v4257_v54 }
 0x516   :  { %3926 = vmatmul.mubr.bf16.gmra.mxu0 %v4525_v44  ;;  %v3902_v44 = vpop.f32.mrf.mxu1 }
 0x518   :  { %v1142_v52 = vpop.f32.mrf.mxu1  ;;  %3970 = vmatpush3.bf16.msra.mxu0 %v4257_v54 }
 0x519   :  { %3971 = vmatprep.subr.bf16.mxu0 %v4258_v4 }
 0x51a   :  { %v3905_v53 = vpop.f32.mrf.mxu1 }
 0x51c   :  { %v1155_v55 = vpop.f32.mrf.mxu1  ;;  %3972 = vmatpush3.bf16.msra.mxu0 %v4258_v4 }
 0x51d   :  { %3973 = vmatprep.subr.bf16.mxu0 %v4259_v5 }
 0x51e   :  { %v3906_v56 = vpop.f32.mrf.mxu1 }
 0x51f   :  { %v4264_v56 = vld [vmem:[%s5036_s2 + $0xe0] sm:$0xff]  }
 0x520   :  { %v1158_v57 = vpop.f32.mrf.mxu1  ;;  %3974 = vmatpush3.bf16.msra.mxu0 %v4259_v5 }
 0x521   :  { %3975 = vmatprep.subr.bf16.mxu0 %v4260_v6 }
 0x522   :  { %v3909_v58 = vpop.f32.mrf.mxu1 }
 0x524   :  { %v1171_v59 = vpop.f32.mrf.mxu1  ;;  %3976 = vmatpush3.bf16.msra.mxu0 %v4260_v6 }
 0x525   :  { %4011 = vmatprep.subr.bf16.mxu0 %v4261_v49 }
 0x526   :  { %v3910_v60 = vpop.f32.mrf.mxu1 }
 0x528   :  { %v1174_v61 = vpop.f32.mrf.mxu1 }
 0x5be   :  { %v3915_v62 = vpop.f32.mrf.mxu0 }
 0x5c0   :  { %v1308_v63 = vpop.f32.mrf.mxu0 }
 0x5c2   :  { %v3916_v0 = vpop.f32.mrf.mxu0 }
 0x5c3   :  { %v1372_v3 = vpack.c.bf16 %v3916_v0, %v3915_v62  ;;  %v4265_v0 = vld [vmem:[%s5036_s2 + $0xd8] sm:$0xff]  }
 0x5c4   :  { %v1311_v1 = vpop.f32.mrf.mxu0 }
 0x5c5   :  { %v1371_v2 = vpack.c.bf16 %v1311_v1, %v1308_v63 }
 0x5c6   :  { %v3919_v7 = vpop.f32.mrf.mxu0 }
 0x5c7   :  { %3945 = vmatprep.mubr.bf16.mxu1 %v1371_v2 }
 0x5c8   :  { %3946 = vmatmul.mubr.bf16.vlgmr.msra.gmra.mxu1 %v1372_v3  ;;  %v1324_v8 = vpop.f32.mrf.mxu0 }
 0x5ca   :  { %v3920_v9 = vpop.f32.mrf.mxu0 }
 0x5cb   :  { %v1374_v12 = vpack.c.bf16 %v3920_v9, %v3919_v7 }
 0x5cc   :  { %v1327_v13 = vpop.f32.mrf.mxu0 }
 0x5cd   :  { %v1373_v14 = vpack.c.bf16 %v1327_v13, %v1324_v8  ;;  %v4266_v8 = vld [vmem:[%s5036_s2 + $0xd0] sm:$0xff]  }
 0x5ce   :  { %v3923_v15 = vpop.f32.mrf.mxu0 }
 0x5cf   :  { %3949 = vmatprep.mubr.bf16.mxu1 %v1373_v14 }
 0x5d0   :  { %v1340_v16 = vpop.f32.mrf.mxu0  ;;  %3950 = vmatmul.mubr.bf16.gmra.mxu1 %v1374_v12 }
 0x5d2   :  { %v3924_v17 = vpop.f32.mrf.mxu0 }
 0x5d3   :  { %v1376_v18 = vpack.c.bf16 %v3924_v17, %v3923_v15 }
 0x5d4   :  { %v1343_v19 = vpop.f32.mrf.mxu0 }
 0x5d5   :  { %v1375_v20 = vpack.c.bf16 %v1343_v19, %v1340_v16 }
 0x5d6   :  { %v3927_v21 = vpop.f32.mrf.mxu0 }
 0x5d7   :  { %3953 = vmatprep.mubr.bf16.mxu1 %v1375_v20 }
 0x5d8   :  { %v1356_v22 = vpop.f32.mrf.mxu0  ;;  %3954 = vmatmul.mubr.bf16.gmra.mxu1 %v1376_v18 }
 0x5da   :  { %v3928_v23 = vpop.f32.mrf.mxu0 }
 0x5db   :  { %v1378_v10 = vpack.c.bf16 %v3928_v23, %v3927_v21 }
 0x5dc   :  { %v1359_v25 = vpop.f32.mrf.mxu0 }
 0x5dd   :  { %v1377_v26 = vpack.c.bf16 %v1359_v25, %v1356_v22 }
 0x5df   :  { %3957 = vmatprep.mubr.bf16.mxu1 %v1377_v26 }
 0x5e0   :  { %3958 = vmatmul.mubr.bf16.gmra.mxu1 %v1378_v10 }
 0x5e1   :  { %3995 = vmatprep.mubr.bf16.mxu1 %v4712_v27 }
 0x688   :  { %v3947_v28 = vpop.f32.mrf.mxu1 }
 0x689   :  { %v1495_v37 = vadd.f32 %v3947_v28, %v4718_v30 }
 0x68a   :  { %v1486_v29 = vpop.f32.mrf.mxu1 }
 0x68b   :  { %v1487_v33 = vadd.f32 %v4718_v30, %v1486_v29  ;;  %v1551_v45 = vmax.f32 %v1495_v37, 0.0  ;;  %v3358_v29 = vld [vmem:[%s5039_s5 + $0x2] ss:$0 sm:$0xff] }
 0x68c   :  { %v3948_v32 = vpop.f32.mrf.mxu1 }
 0x68d   :  { %v1498_v11 = vadd.f32 %v3948_v32, %v4718_v30  ;;  %v1549_v42 = vmax.f32 %v1487_v33, 0.0 }
 0x68e   :  { %v1489_v38 = vpop.f32.mrf.mxu1 }
 0x68f   :  { %v1490_v24 = vadd.f32 %v4718_v30, %v1489_v38  ;;  %v1552_v41 = vmax.f32 %v1498_v11, 0.0  ;;  %v3368_v38 = vld [vmem:[%s5040_s6 + $0x2] ss:$0 sm:$0xff] }
 0x690   :  { %v3951_v48 = vpop.f32.mrf.mxu1 }
 0x691   :  { %v1550_v43 = vmax.f32 %v1490_v24, 0.0  ;;  %v1566_v47 = vpack.c.bf16 %v1552_v41, %v1551_v45  ;;  %v1511_v31 = vadd.f32 %v3951_v48, %v4718_v30 }
 0x692   :  { %v1502_v34 = vpop.f32.mrf.mxu1 }
 0x693   :  { %v1565_v46 = vpack.c.bf16 %v1550_v43, %v1549_v42  ;;  %v1503_v35 = vadd.f32 %v4718_v30, %v1502_v34  ;;  %v1555_v44 = vmax.f32 %v1511_v31, 0.0  ;;  %v3370_v43 = vld [vmem:[%s5041_s7 + $0x2] ss:$0 sm:$0xff]  ;;  %v4778_v31 = vld [vmem:[%s5035_s0 + $0x18] sm:$0xff]  }
 0x694   :  { %v3952_v36 = vpop.f32.mrf.mxu1  ;;  %v4784_v34 = vld [vmem:[%s5035_s0 + $0x20] sm:$0xff]  }
 0x695   :  { %3977 = vmatprep.mubr.bf16.mxu0 %v1565_v46  ;;  %v1514_v40 = vadd.f32 %v3952_v36, %v4718_v30  ;;  %v1553_v52 = vmax.f32 %v1503_v35, 0.0  ;;  %v4790_v35 = vld [vmem:[%s5035_s0 + $0x28] sm:$0xff]   ;;  %v4796_v36 = vld [vmem:[%s5035_s0 + $0x30] sm:$0xff]  }
 0x696   :  { %3978 = vmatmul.mubr.bf16.vlgmr.msra.gmra.mxu0 %v1566_v47  ;;  %v1505_v51 = vpop.f32.mrf.mxu1 }
 0x697   :  { %4012 = vmatpush3.bf16.msra.mxu0 %v4261_v49  ;;  %v1556_v53 = vmax.f32 %v1514_v40, 0.0  ;;  %v1506_v54 = vadd.f32 %v4718_v30, %v1505_v51  ;;  %v4766_v49 = vld [vmem:[%s5035_s0 + $0x8] sm:$0xff]   ;;  %v4269_v51 = vld [vmem:[%s5037_s4 + $0xf8] sm:$0xff]  }
 0x698   :  { %4013 = vmatprep.subr.bf16.mxu0 %v4262_v50  ;;  %v3955_v55 = vpop.f32.mrf.mxu1  ;;  %v4267_v40 = vld [vmem:[%s5036_s2 + $0xc8] sm:$0xff]  }
 0x699   :  { %v1554_v57 = vmax.f32 %v1506_v54, 0.0  ;;  %v1568_v58 = vpack.c.bf16 %v1556_v53, %v1555_v44  ;;  %v1527_v59 = vadd.f32 %v3955_v55, %v4718_v30  ;;  %v4268_v44 = vld [vmem:[%s5036_s2 + $0xc0] sm:$0xff]   ;;  %v4271_v54 = vld [vmem:[%s5037_s4 + $0xe8] sm:$0xff]  }
 0x69a   :  { %v1518_v60 = vpop.f32.mrf.mxu1 }
 0x69b   :  { %4014 = vmatpush3.bf16.msra.mxu0 %v4262_v50  ;;  %v1567_v61 = vpack.c.bf16 %v1554_v57, %v1553_v52  ;;  %v1519_v62 = vadd.f32 %v4718_v30, %v1518_v60  ;;  %v1559_v2 = vmax.f32 %v1527_v59, 0.0  ;;  %v4772_v50 = vld [vmem:[%s5035_s0 + $0x10] sm:$0xff]   ;;  %v4272_v57 = vld [vmem:[%s5037_s4 + $0xe0] sm:$0xff]   ;;  %v4273_v60 = vld [vmem:[%s5037_s4 + $0xd8] sm:$0xff]  }
 0x69c   :  { %4015 = vmatprep.subr.bf16.mxu0 %v4263_v39  ;;  %v3956_v63 = vpop.f32.mrf.mxu1  ;;  %v4270_v52 = vld [vmem:[%s5037_s4 + $0xf0] sm:$0xff]  }
 0x69d   :  { %v1530_v1 = vadd.f32 %v3956_v63, %v4718_v30  ;;  %3981 = vmatprep.mubr.bf16.mxu0 %v1567_v61  ;;  %v1557_v4 = vmax.f32 %v1519_v62, 0.0 }
 0x69e   :  { %v1521_v3 = vpop.f32.mrf.mxu1  ;;  %3982 = vmatmul.mubr.bf16.gmra.mxu0 %v1568_v58 }
 0x69f   :  { %4016 = vmatpush3.bf16.msra.mxu0 %v4263_v39  ;;  %v1560_v5 = vmax.f32 %v1530_v1, 0.0  ;;  %v1522_v6 = vadd.f32 %v4718_v30, %v1521_v3  ;;  %v4802_v39 = vld [vmem:[%s5035_s0 + $0x38] sm:$0xff]  }
 0x6a0   :  { %4017 = vmatprep.subr.bf16.mxu0 %v4264_v56  ;;  %v3959_v7 = vpop.f32.mrf.mxu1 }
 0x6a1   :  { %v1558_v9 = vmax.f32 %v1522_v6, 0.0  ;;  %v1570_v12 = vpack.c.bf16 %v1560_v5, %v1559_v2  ;;  %v1543_v13 = vadd.f32 %v3959_v7, %v4718_v30 }
 0x6a2   :  { %v1534_v14 = vpop.f32.mrf.mxu1 }
 0x6a3   :  { %4018 = vmatpush3.bf16.msra.mxu0 %v4264_v56  ;;  %v1569_v15 = vpack.c.bf16 %v1558_v9, %v1557_v4  ;;  %v1535_v16 = vadd.f32 %v4718_v30, %v1534_v14  ;;  %v1563_v19 = vmax.f32 %v1543_v13, 0.0  ;;  %v4275_v13 = vld [vmem:[%s5037_s4 + $0xc8] sm:$0xff]   ;;  %v4276_v14 = vld [vmem:[%s5037_s4 + $0xc0] sm:$0xff]  }
 0x6a4   :  { %4019 = vmatprep.subr.bf16.mxu0 %v4265_v0  ;;  %v3960_v17 = vpop.f32.mrf.mxu1 }
 0x6a5   :  { %v1546_v18 = vadd.f32 %v3960_v17, %v4718_v30  ;;  %3985 = vmatprep.mubr.bf16.mxu0 %v1569_v15  ;;  %v1561_v21 = vmax.f32 %v1535_v16, 0.0 }
 0x6a6   :  { %v1537_v20 = vpop.f32.mrf.mxu1  ;;  %3986 = vmatmul.mubr.bf16.gmra.mxu0 %v1570_v12  ;;  %v4274_v12 = vld [vmem:[%s5037_s4 + $0xd0] sm:$0xff]  }
 0x6a7   :  { %4020 = vmatpush3.bf16.msra.mxu0 %v4265_v0  ;;  %v1564_v22 = vmax.f32 %v1546_v18, 0.0  ;;  %v1538_v23 = vadd.f32 %v4718_v30, %v1537_v20 }
 0x6a8   :  { %4021 = vmatprep.subr.bf16.mxu0 %v4266_v8 }
 0x6a9   :  { %v1562_v10 = vmax.f32 %v1538_v23, 0.0  ;;  %v1572_v25 = vpack.c.bf16 %v1564_v22, %v1563_v19 }
 0x6ab   :  { %4022 = vmatpush3.bf16.msra.mxu0 %v4266_v8  ;;  %v1571_v26 = vpack.c.bf16 %v1562_v10, %v1561_v21 }
 0x6ac   :  { %4023 = vmatprep.subr.bf16.mxu0 %v4267_v40 }
 0x6ad   :  { %3989 = vmatprep.mubr.bf16.mxu0 %v1571_v26 }
 0x6ae   :  { %3990 = vmatmul.mubr.bf16.gmra.mxu0 %v1572_v25 }
 0x6af   :  { %4024 = vmatpush3.bf16.msra.mxu0 %v4267_v40 }
 0x6b0   :  { %4025 = vmatprep.subr.bf16.mxu0 %v4268_v44 }
 0x6b3   :  { %4026 = vmatpush3.bf16.msra.mxu0 %v4268_v44 }
 0x756   :  { %v3979_v28 = vpop.f32.mrf.mxu0 }
 0x758   :  { %v1680_v32 = vpop.f32.mrf.mxu0 }
 0x759   :  { %v1681_v33 = vadd.f32 %v3358_v29, %v1680_v32 }
 0x75a   :  { %v3980_v11 = vpop.f32.mrf.mxu0 }
 0x75b   :  { %v1743_v37 = vmax.f32 %v1681_v33, 0.0 }
 0x75c   :  { %v1683_v30 = vpop.f32.mrf.mxu0 }
 0x75d   :  { %v1684_v24 = vadd.f32 %v3358_v29, %v1683_v30  ;;  %v1767_v41 = vmul.f32 %v3368_v38, %v1743_v37 }
 0x75e   :  { %v3983_v53 = vpop.f32.mrf.mxu0 }
 0x75f   :  { %v1744_v42 = vmax.f32 %v1684_v24, 0.0  ;;  %v1791_v46 = vadd.f32 %v3370_v43, %v1767_v41  ;;  %v4839_v24 = vld [vmem:[%s5038_s3 + $0x3] ss:$0 sm:$0xff] }
 0x760   :  { %v1696_v55 = vpop.f32.mrf.mxu0 }
 0x761   :  { %v1768_v45 = vmul.f32 %v3368_v38, %v1744_v42  ;;  %v4278_v55 = vld [vmem:[%s5036_s2 + $0x130] sm:$0xff]  }
 0x762   :  { %v3984_v56 = vpop.f32.mrf.mxu0 }
 0x763   :  { %v1792_v47 = vadd.f32 %v3370_v43, %v1768_v45 }
 0x764   :  { %v1699_v58 = vpop.f32.mrf.mxu0 }
 0x765   :  { %v1823_v48 = vpack.c.bf16 %v1792_v47, %v1791_v46 }
 0x766   :  { %v3987_v59 = vpop.f32.mrf.mxu0 }
 0x767   :  { %3993 = vmatprep.subr.bf16.mxu1 %v1823_v48 }
 0x768   :  { %3994 = vmatpush3.bf16.msra.mxu1 %v1823_v48  ;;  %v1712_v61 = vpop.f32.mrf.mxu0 }
 0x769   :  { %4043 = vmatprep.subr.bf16.mxu1 %v4269_v51 }
 0x76a   :  { %v3988_v62 = vpop.f32.mrf.mxu0 }
 0x76b   :  { %3996 = vmatmul.mubr.bf16.vlgmr.msra.gmra.mxu1 %v4766_v49 }
 0x76c   :  { %3999 = vmatprep.mubr.bf16.mxu1 %v4772_v50  ;;  %4044 = vmatpush3.bf16.msra.mxu1 %v4269_v51  ;;  %v1715_v63 = vpop.f32.mrf.mxu0 }
 0x76d   :  { %4045 = vmatprep.subr.bf16.mxu1 %v4270_v52 }
 0x76e   :  { %v3991_v0 = vpop.f32.mrf.mxu0 }
 0x770   :  { %4046 = vmatpush3.bf16.msra.mxu1 %v4270_v52  ;;  %v1728_v1 = vpop.f32.mrf.mxu0 }
 0x771   :  { %4047 = vmatprep.subr.bf16.mxu1 %v4271_v54 }
 0x772   :  { %v3992_v2 = vpop.f32.mrf.mxu0 }
 0x773   :  { %4000 = vmatmul.mubr.bf16.gmra.mxu1 %v4778_v31 }
 0x774   :  { %4003 = vmatprep.mubr.bf16.mxu1 %v4784_v34  ;;  %4048 = vmatpush3.bf16.msra.mxu1 %v4271_v54  ;;  %v1731_v3 = vpop.f32.mrf.mxu0  ;;  %v4277_v54 = vld [vmem:[%s5036_s2 + $0x138] sm:$0xff]  }
 0x775   :  { %4049 = vmatprep.subr.bf16.mxu1 %v4272_v57 }
 0x778   :  { %4050 = vmatpush3.bf16.msra.mxu1 %v4272_v57 }
 0x779   :  { %4051 = vmatprep.subr.bf16.mxu1 %v4273_v60 }
 0x77b   :  { %4004 = vmatmul.mubr.bf16.gmra.mxu1 %v4790_v35 }
 0x77c   :  { %4007 = vmatprep.mubr.bf16.mxu1 %v4796_v36  ;;  %4052 = vmatpush3.bf16.msra.mxu1 %v4273_v60  ;;  %v4279_v60 = vld [vmem:[%s5036_s2 + $0x128] sm:$0xff]  }
 0x77d   :  { %4053 = vmatprep.subr.bf16.mxu1 %v4274_v12 }
 0x780   :  { %4054 = vmatpush3.bf16.msra.mxu1 %v4274_v12 }
 0x781   :  { %4055 = vmatprep.subr.bf16.mxu1 %v4275_v13 }
 0x783   :  { %4008 = vmatmul.mubr.bf16.gmra.mxu1 %v4802_v39 }
 0x784   :  { %4056 = vmatpush3.bf16.msra.mxu1 %v4275_v13 }
 0x785   :  { %4057 = vmatprep.subr.bf16.mxu1 %v4276_v14 }
 0x788   :  { %4058 = vmatpush3.bf16.msra.mxu1 %v4276_v14  ;;  %v4281_v14 = vld [vmem:[%s5036_s2 + $0x118] sm:$0xff]  }
 0x789   :  { %4093 = vmatprep.subr.bf16.mxu1 %v4277_v54 }
 0x82b   :  { %v3997_v4 = vpop.f32.mrf.mxu1 }
 0x82d   :  { %v1865_v5 = vpop.f32.mrf.mxu1 }
 0x82f   :  { %v3998_v6 = vpop.f32.mrf.mxu1 }
 0x830   :  { %v1929_v9 = vpack.c.bf16 %v3998_v6, %v3997_v4  ;;  %v4280_v4 = vld [vmem:[%s5036_s2 + $0x120] sm:$0xff]  }
 0x831   :  { %v1868_v7 = vpop.f32.mrf.mxu1 }
 0x832   :  { %v1928_v8 = vpack.c.bf16 %v1868_v7, %v1865_v5 }
 0x833   :  { %v4001_v15 = vpop.f32.mrf.mxu1 }
 0x834   :  { %4027 = vmatprep.mubr.bf16.mxu0 %v1928_v8 }
 0x835   :  { %4028 = vmatmul.mubr.bf16.vlgmr.msra.gmra.mxu0 %v1929_v9  ;;  %v1881_v16 = vpop.f32.mrf.mxu1 }
 0x837   :  { %v4002_v17 = vpop.f32.mrf.mxu1 }
 0x838   :  { %v1931_v18 = vpack.c.bf16 %v4002_v17, %v4001_v15 }
 0x839   :  { %v1884_v19 = vpop.f32.mrf.mxu1 }
 0x83a   :  { %v1930_v20 = vpack.c.bf16 %v1884_v19, %v1881_v16 }
 0x83b   :  { %v4005_v21 = vpop.f32.mrf.mxu1 }
 0x83c   :  { %4031 = vmatprep.mubr.bf16.mxu0 %v1930_v20 }
 0x83d   :  { %v1897_v22 = vpop.f32.mrf.mxu1  ;;  %4032 = vmatmul.mubr.bf16.gmra.mxu0 %v1931_v18 }
 0x83f   :  { %v4006_v23 = vpop.f32.mrf.mxu1 }
 0x840   :  { %v1933_v10 = vpack.c.bf16 %v4006_v23, %v4005_v21 }
 0x841   :  { %v1900_v25 = vpop.f32.mrf.mxu1 }
 0x842   :  { %v1932_v26 = vpack.c.bf16 %v1900_v25, %v1897_v22  ;;  %v4282_v22 = vld [vmem:[%s5036_s2 + $0x110] sm:$0xff]  }
 0x843   :  { %v4009_v28 = vpop.f32.mrf.mxu1 }
 0x844   :  { %4035 = vmatprep.mubr.bf16.mxu0 %v1932_v26 }
 0x845   :  { %v1913_v29 = vpop.f32.mrf.mxu1  ;;  %4036 = vmatmul.mubr.bf16.gmra.mxu0 %v1933_v10 }
 0x847   :  { %v4010_v32 = vpop.f32.mrf.mxu1 }
 0x848   :  { %v1935_v33 = vpack.c.bf16 %v4010_v32, %v4009_v28 }
 0x849   :  { %v1916_v11 = vpop.f32.mrf.mxu1 }
 0x84a   :  { %v1934_v37 = vpack.c.bf16 %v1916_v11, %v1913_v29 }
 0x84c   :  { %4039 = vmatprep.mubr.bf16.mxu0 %v1934_v37 }
 0x84d   :  { %4040 = vmatmul.mubr.bf16.gmra.mxu0 %v1935_v33 }
 0x84e   :  { %4077 = vmatprep.mubr.bf16.mxu0 %v4712_v27 }
 0x8f5   :  { %v4029_v38 = vpop.f32.mrf.mxu0 }
 0x8f6   :  { %v2052_v45 = vadd.f32 %v4029_v38, %v4839_v24 }
 0x8f7   :  { %v2043_v30 = vpop.f32.mrf.mxu0 }
 0x8f8   :  { %v2044_v42 = vadd.f32 %v4839_v24, %v2043_v30  ;;  %v2108_v44 = vmax.f32 %v2052_v45, 0.0 }
 0x8f9   :  { %v4030_v41 = vpop.f32.mrf.mxu0 }
 0x8fa   :  { %v2055_v43 = vadd.f32 %v4030_v41, %v4839_v24  ;;  %v2106_v40 = vmax.f32 %v2044_v42, 0.0 }
 0x8fb   :  { %v2046_v46 = vpop.f32.mrf.mxu0 }
 0x8fc   :  { %v2047_v47 = vadd.f32 %v4839_v24, %v2046_v46  ;;  %v2109_v48 = vmax.f32 %v2055_v43, 0.0 }
 0x8fd   :  { %v4033_v53 = vpop.f32.mrf.mxu0 }
 0x8fe   :  { %v2107_v27 = vmax.f32 %v2047_v47, 0.0  ;;  %v2123_v52 = vpack.c.bf16 %v2109_v48, %v2108_v44  ;;  %v2068_v56 = vadd.f32 %v4033_v53, %v4839_v24  ;;  %v3414_v47 = vld [vmem:[%s5039_s5 + $0x3] ss:$0 sm:$0xff] }
 0x8ff   :  { %v2059_v57 = vpop.f32.mrf.mxu0 }
 0x900   :  { %v2122_v51 = vpack.c.bf16 %v2107_v27, %v2106_v40  ;;  %v2060_v58 = vadd.f32 %v4839_v24, %v2059_v57  ;;  %v2112_v62 = vmax.f32 %v2068_v56, 0.0 }
 0x901   :  { %v4034_v59 = vpop.f32.mrf.mxu0 }
 0x902   :  { %4059 = vmatprep.mubr.bf16.mxu1 %v2122_v51  ;;  %v2071_v61 = vadd.f32 %v4034_v59, %v4839_v24  ;;  %v2110_v0 = vmax.f32 %v2060_v58, 0.0  ;;  %v3424_v51 = vld [vmem:[%s5040_s6 + $0x3] ss:$0 sm:$0xff] }
 0x903   :  { %4060 = vmatmul.mubr.bf16.vlgmr.msra.gmra.mxu1 %v2123_v52  ;;  %v2062_v63 = vpop.f32.mrf.mxu0 }
 0x904   :  { %4094 = vmatpush3.bf16.msra.mxu1 %v4277_v54  ;;  %v2113_v1 = vmax.f32 %v2071_v61, 0.0  ;;  %v2063_v2 = vadd.f32 %v4839_v24, %v2062_v63  ;;  %v4288_v61 = vld [vmem:[%s5037_s4 + $0x120] sm:$0xff]  }
 0x905   :  { %4095 = vmatprep.subr.bf16.mxu1 %v4278_v55  ;;  %v4037_v3 = vpop.f32.mrf.mxu0 }
 0x906   :  { %v2111_v5 = vmax.f32 %v2063_v2, 0.0  ;;  %v2125_v6 = vpack.c.bf16 %v2113_v1, %v2112_v62  ;;  %v2084_v7 = vadd.f32 %v4037_v3, %v4839_v24 }
 0x907   :  { %v2075_v8 = vpop.f32.mrf.mxu0 }
 0x908   :  { %4096 = vmatpush3.bf16.msra.mxu1 %v4278_v55  ;;  %v2124_v9 = vpack.c.bf16 %v2111_v5, %v2110_v0  ;;  %v2076_v12 = vadd.f32 %v4839_v24, %v2075_v8  ;;  %v2116_v16 = vmax.f32 %v2084_v7, 0.0  ;;  %v3426_v55 = vld [vmem:[%s5041_s7 + $0x3] ss:$0 sm:$0xff]  ;;  %v4289_v0 = vld [vmem:[%s5037_s4 + $0x118] sm:$0xff]  }
 0x909   :  { %4097 = vmatprep.subr.bf16.mxu1 %v4279_v60  ;;  %v4038_v13 = vpop.f32.mrf.mxu0 }
 0x90a   :  { %v2087_v15 = vadd.f32 %v4038_v13, %v4839_v24  ;;  %4063 = vmatprep.mubr.bf16.mxu1 %v2124_v9  ;;  %v2114_v18 = vmax.f32 %v2076_v12, 0.0 }
 0x90b   :  { %v2078_v17 = vpop.f32.mrf.mxu0  ;;  %4064 = vmatmul.mubr.bf16.gmra.mxu1 %v2125_v6 }
 0x90c   :  { %4098 = vmatpush3.bf16.msra.mxu1 %v4279_v60  ;;  %v2117_v19 = vmax.f32 %v2087_v15, 0.0  ;;  %v2079_v20 = vadd.f32 %v4839_v24, %v2078_v17  ;;  %v4283_v60 = vld [vmem:[%s5036_s2 + $0x108] sm:$0xff]  }
 0x90d   :  { %4099 = vmatprep.subr.bf16.mxu1 %v4280_v4  ;;  %v4041_v21 = vpop.f32.mrf.mxu0  ;;  %v4291_v17 = vld [vmem:[%s5037_s4 + $0x108] sm:$0xff]  }
 0x90e   :  { %v2115_v23 = vmax.f32 %v2079_v20, 0.0  ;;  %v2127_v10 = vpack.c.bf16 %v2117_v19, %v2116_v16  ;;  %v2100_v25 = vadd.f32 %v4041_v21, %v4839_v24  ;;  %v4290_v16 = vld [vmem:[%s5037_s4 + $0x110] sm:$0xff]  }
 0x90f   :  { %v2091_v26 = vpop.f32.mrf.mxu0 }
 0x910   :  { %4100 = vmatpush3.bf16.msra.mxu1 %v4280_v4  ;;  %v2126_v28 = vpack.c.bf16 %v2115_v23, %v2114_v18  ;;  %v2092_v29 = vadd.f32 %v4839_v24, %v2091_v26  ;;  %v2120_v11 = vmax.f32 %v2100_v25, 0.0  ;;  %v4292_v18 = vld [vmem:[%s5037_s4 + $0x100] sm:$0xff]  }
 0x911   :  { %4101 = vmatprep.subr.bf16.mxu1 %v4281_v14  ;;  %v4042_v32 = vpop.f32.mrf.mxu0 }
 0x912   :  { %v2103_v33 = vadd.f32 %v4042_v32, %v4839_v24  ;;  %4067 = vmatprep.mubr.bf16.mxu1 %v2126_v28  ;;  %v2118_v38 = vmax.f32 %v2092_v29, 0.0 }
 0x913   :  { %v2094_v37 = vpop.f32.mrf.mxu0  ;;  %4068 = vmatmul.mubr.bf16.gmra.mxu1 %v2127_v10 }
 0x914   :  { %4102 = vmatpush3.bf16.msra.mxu1 %v4281_v14  ;;  %v2121_v30 = vmax.f32 %v2103_v33, 0.0  ;;  %v2095_v41 = vadd.f32 %v4839_v24, %v2094_v37 }
 0x915   :  { %4103 = vmatprep.subr.bf16.mxu1 %v4282_v22 }
 0x916   :  { %v2119_v42 = vmax.f32 %v2095_v41, 0.0  ;;  %v2129_v43 = vpack.c.bf16 %v2121_v30, %v2120_v11 }
 0x918   :  { %4104 = vmatpush3.bf16.msra.mxu1 %v4282_v22  ;;  %v2128_v45 = vpack.c.bf16 %v2119_v42, %v2118_v38 }
 0x919   :  { %4105 = vmatprep.subr.bf16.mxu1 %v4283_v60 }
 0x91a   :  { %4071 = vmatprep.mubr.bf16.mxu1 %v2128_v45 }
 0x91b   :  { %4072 = vmatmul.mubr.bf16.gmra.mxu1 %v2129_v43 }
 0x91c   :  { %4106 = vmatpush3.bf16.msra.mxu1 %v4283_v60 }
 0x9c3   :  { %v4061_v46 = vpop.f32.mrf.mxu1 }
 0x9c4   :  { %v4924_v46 = vld [vmem:[%s5038_s3 + $0x4] ss:$0 sm:$0xff] }
 0x9c5   :  { %v2237_v48 = vpop.f32.mrf.mxu1 }
 0x9c6   :  { %v2238_v40 = vadd.f32 %v3414_v47, %v2237_v48 }
 0x9c7   :  { %v4062_v27 = vpop.f32.mrf.mxu1 }
 0x9c8   :  { %v2300_v44 = vmax.f32 %v2238_v40, 0.0 }
 0x9c9   :  { %v2240_v24 = vpop.f32.mrf.mxu1 }
 0x9ca   :  { %v2241_v52 = vadd.f32 %v3414_v47, %v2240_v24  ;;  %v2324_v53 = vmul.f32 %v3424_v51, %v2300_v44 }
 0x9cc   :  { %v2301_v54 = vmax.f32 %v2241_v52, 0.0  ;;  %v2348_v57 = vadd.f32 %v3426_v55, %v2324_v53 }
 0x9ce   :  { %v2325_v56 = vmul.f32 %v3424_v51, %v2301_v54 }
 0x9d0   :  { %v2349_v58 = vadd.f32 %v3426_v55, %v2325_v56 }
 0x9d2   :  { %v2380_v59 = vpack.c.bf16 %v2349_v58, %v2348_v57  ;;  %v4321_v57 = vmov 0.0  }
 0x9d4   :  { %4075 = vmatprep.subr.bf16.mxu0 %v2380_v59 }
 0x9d5   :  { %4076 = vmatpush3.bf16.msra.mxu0 %v2380_v59  ;;  %v4293_v59 = vld [vmem:[%s5042_s9 + $0x38] sm:$0xff]  }
 0x9d8   :  { %4078 = vmatmul.mubr.bf16.vlgmr.msra.gmra.mxu0 %v4766_v49  ;;  %v4284_v49 = vld [vmem:[%s5036_s2 + $0x100] sm:$0xff]  }
 0x9d9   :  { %4081 = vmatprep.mubr.bf16.mxu0 %v4772_v50  ;;  %4107 = vmatprep.subr.bf16.mxu1 %v4284_v49  ;;  %v4285_v50 = vld [vmem:[%s5037_s4 + $0x138] sm:$0xff]  }
 0x9da   :  { %4108 = vmatpush3.bf16.msra.mxu1 %v4284_v49  ;;  %4125 = vmatprep.subr.bf16.mxu0 %v4285_v50 }
 0x9db   :  { %4126 = vmatpush3.bf16.msra.mxu0 %v4285_v50  ;;  %4157 = vmatprep.subr.bf16.mxu1 %v4321_v57 }
 0x9e0   :  { %4082 = vmatmul.mubr.bf16.gmra.mxu0 %v4778_v31  ;;  %v4286_v31 = vld [vmem:[%s5037_s4 + $0x130] sm:$0xff]  }
 0x9e1   :  { %4085 = vmatprep.mubr.bf16.mxu0 %v4784_v34  ;;  %v4065_v34 = vpop.f32.mrf.mxu1  ;;  %4127 = vmatprep.subr.bf16.mxu0 %v4286_v31 }
 0x9e2   :  { %4128 = vmatpush3.bf16.msra.mxu0 %v4286_v31  ;;  %v4294_v31 = vld [vmem:[%s5042_s9 + $0x30] sm:$0xff]  }
 0x9e8   :  { %4086 = vmatmul.mubr.bf16.gmra.mxu0 %v4790_v35  ;;  %v4287_v35 = vld [vmem:[%s5037_s4 + $0x128] sm:$0xff]  }
 0x9e9   :  { %4089 = vmatprep.mubr.bf16.mxu0 %v4796_v36  ;;  %v2253_v36 = vpop.f32.mrf.mxu1  ;;  %4129 = vmatprep.subr.bf16.mxu0 %v4287_v35 }
 0x9ea   :  { %4130 = vmatpush3.bf16.msra.mxu0 %v4287_v35 }
 0x9eb   :  { %4131 = vmatprep.subr.bf16.mxu0 %v4288_v61 }
 0x9ee   :  { %4132 = vmatpush3.bf16.msra.mxu0 %v4288_v61  ;;  %v4295_v61 = vld [vmem:[%s5042_s9 + $0x28] sm:$0xff]  }
 0x9ef   :  { %4133 = vmatprep.subr.bf16.mxu0 %v4289_v0 }
 0x9f0   :  { %4090 = vmatmul.mubr.bf16.gmra.mxu0 %v4802_v39  ;;  %v4066_v39 = vpop.f32.mrf.mxu1 }
 0x9f2   :  { %v2256_v62 = vpop.f32.mrf.mxu1  ;;  %4134 = vmatpush3.bf16.msra.mxu0 %v4289_v0 }
 0x9f3   :  { %4135 = vmatprep.subr.bf16.mxu0 %v4290_v16 }
 0x9f4   :  { %v4069_v63 = vpop.f32.mrf.mxu1 }
 0x9f6   :  { %v2269_v1 = vpop.f32.mrf.mxu1  ;;  %4136 = vmatpush3.bf16.msra.mxu0 %v4290_v16 }
 0x9f7   :  { %4137 = vmatprep.subr.bf16.mxu0 %v4291_v17 }
 0x9f8   :  { %v4070_v2 = vpop.f32.mrf.mxu1 }
 0x9fa   :  { %v2272_v3 = vpop.f32.mrf.mxu1  ;;  %4138 = vmatpush3.bf16.msra.mxu0 %v4291_v17 }
 0x9fb   :  { %4139 = vmatprep.subr.bf16.mxu0 %v4292_v18 }
 0x9fc   :  { %v4073_v4 = vpop.f32.mrf.mxu1 }
 0x9fe   :  { %v2285_v5 = vpop.f32.mrf.mxu1  ;;  %4140 = vmatpush3.bf16.msra.mxu0 %v4292_v18  ;;  %v4297_v18 = vld [vmem:[%s5042_s9 + $0x18] sm:$0xff]  }
 0x9ff   :  { %4163 = vmatprep.subr.bf16.mxu0 %v4321_v57 }
 0xa00   :  { %v4074_v6 = vpop.f32.mrf.mxu1 }
 0xa02   :  { %v2288_v7 = vpop.f32.mrf.mxu1 }
 0xa98   :  { %v4079_v8 = vpop.f32.mrf.mxu0 }
 0xa9a   :  { %v2422_v9 = vpop.f32.mrf.mxu0 }
 0xa9c   :  { %v4080_v12 = vpop.f32.mrf.mxu0 }
 0xa9d   :  { %v2486_v15 = vpack.c.bf16 %v4080_v12, %v4079_v8  ;;  %v4296_v8 = vld [vmem:[%s5042_s9 + $0x20] sm:$0xff]  }
 0xa9e   :  { %v2425_v13 = vpop.f32.mrf.mxu0 }
 0xa9f   :  { %v2485_v14 = vpack.c.bf16 %v2425_v13, %v2422_v9 }
 0xaa0   :  { %v4083_v19 = vpop.f32.mrf.mxu0 }
 0xaa1   :  { %4109 = vmatprep.mubr.bf16.mxu1 %v2485_v14 }
 0xaa2   :  { %4110 = vmatmul.mubr.bf16.vlgmr.msra.gmra.mxu1 %v2486_v15  ;;  %v2438_v20 = vpop.f32.mrf.mxu0 }
 0xaa4   :  { %v4084_v21 = vpop.f32.mrf.mxu0 }
 0xaa5   :  { %v2488_v22 = vpack.c.bf16 %v4084_v21, %v4083_v19 }
 0xaa6   :  { %v2441_v23 = vpop.f32.mrf.mxu0 }
 0xaa7   :  { %v2487_v10 = vpack.c.bf16 %v2441_v23, %v2438_v20 }
 0xaa8   :  { %v4087_v25 = vpop.f32.mrf.mxu0 }
 0xaa9   :  { %4113 = vmatprep.mubr.bf16.mxu1 %v2487_v10 }
 0xaaa   :  { %v2454_v26 = vpop.f32.mrf.mxu0  ;;  %4114 = vmatmul.mubr.bf16.gmra.mxu1 %v2488_v22 }
 0xaac   :  { %v4088_v28 = vpop.f32.mrf.mxu0 }
 0xaad   :  { %v2490_v29 = vpack.c.bf16 %v4088_v28, %v4087_v25 }
 0xaae   :  { %v2457_v32 = vpop.f32.mrf.mxu0 }
 0xaaf   :  { %v2489_v33 = vpack.c.bf16 %v2457_v32, %v2454_v26  ;;  %v4298_v26 = vld [vmem:[%s5042_s9 + $0x10] sm:$0xff]  }
 0xab0   :  { %v4091_v11 = vpop.f32.mrf.mxu0 }
 0xab1   :  { %4117 = vmatprep.mubr.bf16.mxu1 %v2489_v33 }
 0xab2   :  { %v2470_v37 = vpop.f32.mrf.mxu0  ;;  %4118 = vmatmul.mubr.bf16.gmra.mxu1 %v2490_v29 }
 0xab4   :  { %v4092_v38 = vpop.f32.mrf.mxu0 }
 0xab5   :  { %v2492_v30 = vpack.c.bf16 %v4092_v38, %v4091_v11 }
 0xab6   :  { %v2473_v41 = vpop.f32.mrf.mxu0 }
 0xab7   :  { %v2491_v42 = vpack.c.bf16 %v2473_v41, %v2470_v37 }
 0xab9   :  { %4121 = vmatprep.mubr.bf16.mxu1 %v2491_v42 }
 0xaba   :  { %4122 = vmatmul.mubr.bf16.gmra.mxu1 %v2492_v30  ;;  %v4299_v30 = vld [vmem:[%s5042_s9 + $0x8] sm:$0xff]  }
 0xabb   :  { %4159 = vmatprep.mubr.msk.bf16.mxu1 %vm4322_vm0, %v4321_v57 }
 0xb62   :  { %v4111_v43 = vpop.f32.mrf.mxu1 }
 0xb63   :  { %v2609_v27 = vadd.f32 %v4111_v43, %v4924_v46 }
 0xb64   :  { %v2600_v45 = vpop.f32.mrf.mxu1 }
 0xb65   :  { %v2601_v48 = vadd.f32 %v4924_v46, %v2600_v45  ;;  %v2665_v54 = vmax.f32 %v2609_v27, 0.0 }
 0xb66   :  { %v4112_v47 = vpop.f32.mrf.mxu1 }
 0xb67   :  { %v2612_v40 = vadd.f32 %v4112_v47, %v4924_v46  ;;  %v2663_v52 = vmax.f32 %v2601_v48, 0.0 }
 0xb68   :  { %v2603_v44 = vpop.f32.mrf.mxu1 }
 0xb69   :  { %v2604_v51 = vadd.f32 %v4924_v46, %v2603_v44  ;;  %v2666_v24 = vmax.f32 %v2612_v40, 0.0  ;;  %v3480_v44 = vld [vmem:[%s5040_s6 + $0x4] ss:$0 sm:$0xff] }
 0xb6a   :  { %v4115_v58 = vpop.f32.mrf.mxu1 }
 0xb6b   :  { %v2664_v53 = vmax.f32 %v2604_v51, 0.0  ;;  %v2680_v56 = vpack.c.bf16 %v2666_v24, %v2665_v54  ;;  %v2625_v60 = vadd.f32 %v4115_v58, %v4924_v46  ;;  %v3482_v54 = vld [vmem:[%s5041_s7 + $0x4] ss:$0 sm:$0xff] }
 0xb6c   :  { %v2616_v49 = vpop.f32.mrf.mxu1 }
 0xb6d   :  { %v2679_v55 = vpack.c.bf16 %v2664_v53, %v2663_v52  ;;  %v2617_v50 = vadd.f32 %v4924_v46, %v2616_v49  ;;  %v2669_v36 = vmax.f32 %v2625_v60, 0.0  ;;  %v2937_v60 = vld [vmem:[%s5043_s8] sm:$0xf] }
 0xb6e   :  { %v4116_v34 = vpop.f32.mrf.mxu1  ;;  %v4300_v49 = vld [vmem:[%s5042_s9] sm:$0xff]  }
 0xb6f   :  { %4141 = vmatprep.mubr.bf16.mxu0 %v2679_v55  ;;  %v2628_v35 = vadd.f32 %v4116_v34, %v4924_v46  ;;  %v2667_v62 = vmax.f32 %v2617_v50, 0.0  ;;  %v4301_v50 = vld [vmem:[%s5044_s11 + $0x38] sm:$0xff]   ;;  %v4303_v34 = vld [vmem:[%s5044_s11 + $0x28] sm:$0xff]  }
 0xb70   :  { %4142 = vmatmul.mubr.bf16.vlgmr.msra.gmra.mxu0 %v2680_v56  ;;  %v2619_v39 = vpop.f32.mrf.mxu1 }
 0xb71   :  { %4164 = vmatpush3.bf16.msra.mxu0 %v4293_v59  ;;  %v2670_v63 = vmax.f32 %v2628_v35, 0.0  ;;  %v2620_v0 = vadd.f32 %v4924_v46, %v2619_v39  ;;  %v4304_v39 = vld [vmem:[%s5044_s11 + $0x20] sm:$0xff]  }
 0xb72   :  { %4165 = vmatprep.subr.bf16.mxu0 %v4321_v57  ;;  %v4119_v1 = vpop.f32.mrf.mxu1 }
 0xb73   :  { %v2668_v2 = vmax.f32 %v2620_v0, 0.0  ;;  %v2682_v3 = vpack.c.bf16 %v2670_v63, %v2669_v36  ;;  %v2641_v4 = vadd.f32 %v4119_v1, %v4924_v46  ;;  %v4305_v63 = vld [vmem:[%s5044_s11 + $0x18] sm:$0xff]  }
 0xb74   :  { %v2632_v5 = vpop.f32.mrf.mxu1 }
 0xb75   :  { %4166 = vmatpush3.bf16.msra.mxu0 %v4294_v31  ;;  %v2681_v6 = vpack.c.bf16 %v2668_v2, %v2667_v62  ;;  %v2633_v7 = vadd.f32 %v4924_v46, %v2632_v5  ;;  %v2673_v13 = vmax.f32 %v2641_v4, 0.0  ;;  %v4302_v31 = vld [vmem:[%s5044_s11 + $0x30] sm:$0xff]  }
 0xb76   :  { %4167 = vmatprep.subr.bf16.mxu0 %v4321_v57  ;;  %v4120_v9 = vpop.f32.mrf.mxu1  ;;  %v4306_v2 = vld [vmem:[%s5044_s11 + $0x10] sm:$0xff]  }
 0xb77   :  { %v2644_v12 = vadd.f32 %v4120_v9, %v4924_v46  ;;  %4145 = vmatprep.mubr.bf16.mxu0 %v2681_v6  ;;  %v2671_v15 = vmax.f32 %v2633_v7, 0.0 }
 0xb78   :  { %v2635_v14 = vpop.f32.mrf.mxu1  ;;  %4146 = vmatmul.mubr.bf16.gmra.mxu0 %v2682_v3 }
 0xb79   :  { %4168 = vmatpush3.bf16.msra.mxu0 %v4295_v61  ;;  %v2674_v16 = vmax.f32 %v2644_v12, 0.0  ;;  %v2636_v17 = vadd.f32 %v4924_v46, %v2635_v14 }
 0xb7a   :  { %4169 = vmatprep.subr.bf16.mxu0 %v4321_v57  ;;  %v4123_v19 = vpop.f32.mrf.mxu1 }
 0xb7b   :  { %v2672_v20 = vmax.f32 %v2636_v17, 0.0  ;;  %v2684_v21 = vpack.c.bf16 %v2674_v16, %v2673_v13  ;;  %v2657_v22 = vadd.f32 %v4123_v19, %v4924_v46  ;;  %v4307_v16 = vld [vmem:[%s5044_s11 + $0x8] sm:$0xff]   ;;  %v4308_v17 = vld [vmem:[%s5044_s11] sm:$0xff]  }
 0xb7c   :  { %v2648_v23 = vpop.f32.mrf.mxu1 }
 0xb7d   :  { %4170 = vmatpush3.bf16.msra.mxu0 %v4296_v8  ;;  %v2683_v10 = vpack.c.bf16 %v2672_v20, %v2671_v15  ;;  %v2649_v25 = vadd.f32 %v4924_v46, %v2648_v23  ;;  %v2677_v32 = vmax.f32 %v2657_v22, 0.0 }
 0xb7e   :  { %4171 = vmatprep.subr.bf16.mxu0 %v4321_v57  ;;  %v4124_v28 = vpop.f32.mrf.mxu1 }
 0xb7f   :  { %v2660_v29 = vadd.f32 %v4124_v28, %v4924_v46  ;;  %4149 = vmatprep.mubr.bf16.mxu0 %v2683_v10  ;;  %v2675_v11 = vmax.f32 %v2649_v25, 0.0 }
 0xb80   :  { %v2651_v33 = vpop.f32.mrf.mxu1  ;;  %4150 = vmatmul.mubr.bf16.gmra.mxu0 %v2684_v21 }
 0xb81   :  { %4172 = vmatpush3.bf16.msra.mxu0 %v4297_v18  ;;  %v2678_v37 = vmax.f32 %v2660_v29, 0.0  ;;  %v2652_v38 = vadd.f32 %v4924_v46, %v2651_v33  ;;  %v3470_v46 = vld [vmem:[%s5039_s5 + $0x4] ss:$0 sm:$0xff]  ;;  %v3483_v18 = vld [vmem:[%s5045_s10] ss:$0 sm:$0xff] }
 0xb82   :  { %4173 = vmatprep.subr.bf16.mxu0 %v4321_v57 }
 0xb83   :  { %v2676_v41 = vmax.f32 %v2652_v38, 0.0  ;;  %v2686_v42 = vpack.c.bf16 %v2678_v37, %v2677_v32 }
 0xb85   :  { %4174 = vmatpush3.bf16.msra.mxu0 %v4298_v26  ;;  %v2685_v43 = vpack.c.bf16 %v2676_v41, %v2675_v11  ;;  %v3211_v26 = vlaneseq }
 0xb86   :  { %4175 = vmatprep.subr.bf16.mxu0 %v4321_v57 }
 0xb87   :  { %4153 = vmatprep.mubr.bf16.mxu0 %v2685_v43  ;;  %v3212_v28 = vand.u32 127, %v3211_v26 }
 0xb88   :  { %4154 = vmatmul.mubr.bf16.gmra.mxu0 %v2686_v42 }
 0xb89   :  { %4176 = vmatpush3.bf16.msra.mxu0 %v4299_v30  ;;  %4179 = vmatprep.mubr.msk.bf16.mxu0 %vm4322_vm0, %v4321_v57  ;;  %vm3213_vm1 = vcmp.lt.s32.totalorder %v3212_v28, 4 }
 0xb8a   :  { %4177 = vmatprep.subr.bf16.mxu0 %v4321_v57 }
 0xb8d   :  { %4178 = vmatpush3.bf16.msra.mxu0 %v4300_v49 }
 0xc30   :  { %v4143_v45 = vpop.f32.mrf.mxu0 }
 0xc32   :  { %v2794_v47 = vpop.f32.mrf.mxu0 }
 0xc33   :  { %v2795_v48 = vadd.f32 %v3470_v46, %v2794_v47 }
 0xc34   :  { %v4144_v40 = vpop.f32.mrf.mxu0 }
 0xc35   :  { %v2857_v27 = vmax.f32 %v2795_v48, 0.0 }
 0xc36   :  { %v2797_v51 = vpop.f32.mrf.mxu0 }
 0xc37   :  { %v2798_v24 = vadd.f32 %v3470_v46, %v2797_v51  ;;  %v2881_v52 = vmul.f32 %v3480_v44, %v2857_v27 }
 0xc38   :  { %v4147_v35 = vpop.f32.mrf.mxu0 }
 0xc39   :  { %v2858_v53 = vmax.f32 %v2798_v24, 0.0  ;;  %v2905_v56 = vadd.f32 %v3482_v54, %v2881_v52 }
 0xc3a   :  { %v2810_v36 = vpop.f32.mrf.mxu0 }
 0xc3b   :  { %v2882_v55 = vmul.f32 %v3480_v44, %v2858_v53 }
 0xc3c   :  { %v4148_v61 = vpop.f32.mrf.mxu0 }
 0xc3d   :  { %v2906_v58 = vadd.f32 %v3482_v54, %v2882_v55 }
 0xc3e   :  { %v2813_v62 = vpop.f32.mrf.mxu0 }
 0xc3f   :  { %v2938_v59 = vpack.c.bf16 %v2906_v58, %v2905_v56 }
 0xc40   :  { %v4151_v0 = vpop.f32.mrf.mxu0 }
 0xc41   :  { %4158 = vmatpush3.bf16.msra.mxu1 %v2938_v59 }
 0xc42   :  { %4183 = vmatprep.subr.bf16.mxu1 %v4321_v57  ;;  %v2826_v1 = vpop.f32.mrf.mxu0 }
 0xc44   :  { %4160 = vmatmul.mubr.bf16.vlgmr.msra.gmra.mxu1 %v2937_v60  ;;  %v4152_v3 = vpop.f32.mrf.mxu0 }
 0xc45   :  { %4199 = vmatprep.mubr.msk.bf16.mxu1 %vm4322_vm0, %v4321_v57  ;;  %4184 = vmatpush3.bf16.msra.mxu1 %v4301_v50 }
 0xc46   :  { %4185 = vmatprep.subr.bf16.mxu1 %v4321_v57  ;;  %v2829_v4 = vpop.f32.mrf.mxu0 }
 0xc48   :  { %v4155_v5 = vpop.f32.mrf.mxu0 }
 0xc49   :  { %4186 = vmatpush3.bf16.msra.mxu1 %v4302_v31 }
 0xc4a   :  { %4187 = vmatprep.subr.bf16.mxu1 %v4321_v57  ;;  %v2842_v6 = vpop.f32.mrf.mxu0 }
 0xc4c   :  { %v4156_v7 = vpop.f32.mrf.mxu0 }
 0xc4d   :  { %4188 = vmatpush3.bf16.msra.mxu1 %v4303_v34 }
 0xc4e   :  { %4189 = vmatprep.subr.bf16.mxu1 %v4321_v57  ;;  %v2845_v8 = vpop.f32.mrf.mxu0 }
 0xc51   :  { %4190 = vmatpush3.bf16.msra.mxu1 %v4304_v39 }
 0xc52   :  { %4191 = vmatprep.subr.bf16.mxu1 %v4321_v57 }
 0xc55   :  { %4192 = vmatpush3.bf16.msra.mxu1 %v4305_v63 }
 0xc56   :  { %4193 = vmatprep.subr.bf16.mxu1 %v4321_v57 }
 0xc59   :  { %4194 = vmatpush3.bf16.msra.mxu1 %v4306_v2 }
 0xc5a   :  { %4195 = vmatprep.subr.bf16.mxu1 %v4321_v57 }
 0xc5d   :  { %4196 = vmatpush3.bf16.msra.mxu1 %v4307_v16 }
 0xc5e   :  { %4197 = vmatprep.subr.bf16.mxu1 %v4321_v57  ;;  %v3492_v57 = vld [vmem:[%s5046_s12] ss:$0 sm:$0xff] }
 0xc61   :  { %4198 = vmatpush3.bf16.msra.mxu1 %v4308_v17 }
 0xd04   :  { %v2980_v9 = vpop.f32.mrf.mxu1 }
 0xd05   :  { %v2986_v12 = vpack.c.bf16 %v2980_v9, %v2980_v9 }
 0xd06   :  { %v4161_v13 = vpop.f32.mrf.mxu1 }
 0xd07   :  { %4180 = vmatmul.mubr.bf16.vlgmr.msra.gmra.mxu0 %v2986_v12 }
 0xd08   :  { %v2983_v14 = vpop.f32.mrf.mxu1 }
 0xd0a   :  { %v4162_v15 = vpop.f32.mrf.mxu1 }
 0xdc7   :  { %v3092_v19 = vpop.f32.mrf.mxu0 }
 0xdc8   :  { %v3093_v20 = vadd.f32 %v3483_v18, %v3092_v19 }
 0xdc9   :  { %v4181_v21 = vpop.f32.mrf.mxu0 }
 0xdca   :  { %v3098_v22 = vmax.f32 %v3093_v20, 0.0 }
 0xdcb   :  { %v3095_v23 = vpop.f32.mrf.mxu0 }
 0xdcc   :  { %v3099_v10 = vpack.c.bf16 %v3098_v22, %v3098_v22 }
 0xdcd   :  { %v4182_v25 = vpop.f32.mrf.mxu0 }
 0xdce   :  { %4200 = vmatmul.mubr.bf16.vlgmr.msra.gmra.mxu1 %v3099_v10 }
 0xe8e   :  { %v3205_v29 = vpop.f32.mrf.mxu1 }
 0xe8f   :  { %v3206_v32 = vadd.f32 %v3492_v57, %v3205_v29 }
 0xe90   :  { %v4201_v33 = vpop.f32.mrf.mxu1 }
 0xe91   :  { %v3214_v11 = vsel %vm3213_vm1, %v3206_v32, -1e+30 }
 0xe92   :  { %3215 = vmax.xlane.f32.xlu0 %v3214_v11  ;;  %v3208_v37 = vpop.f32.mrf.mxu1 }
 0xe94   :  { %v4202_v38 = vpop.f32.mrf.mxu1 }
 0xf1b   :  { %v3216_v30 = vpop.xlane.xlu0 %3215 }
 0xf1c   :  { %v3217_v41 = vsub.f32 %v3214_v11, %v3216_v30 }
 0xf1e   :  { %v3218_v42 = vmul.f32 1.442695, %v3217_v41 }
 0xf20   :  { %4309 = vpow2.f32 %v3218_v42 }
 0xf2d   :  { %v4310_v43 = vpop.eup %4309 }
 0xf2e   :  { %3220 = vadd.xlane.f32.xlu0 %v4310_v43 }
 0xfb7   :  { %v3221_v45 = vpop.xlane.xlu0 %3220 }
 0xfb8   :  { %4311 = vlog2.f32 %v3221_v45 }
 0xfc5   :  { %v4312_v46 = vpop.eup %4311 }
 0xfc6   :  { %v3223_v47 = vmul.f32 0.6931472, %v4312_v46 }
 0xfc8   :  { %v3224_v48 = vadd.f32 %v3223_v47, %v3216_v30 }
 0xfca   :  { %v3225_v40 = vsub.f32 %v3214_v11, %v3224_v48 }
 0xfcc   :  { %3226 = vst [vmem:[%s5047_s13] sm:$0xff] %v3225_v40 }

</bundles_post_ra>
